<compile_context>
chip_gen: v7x
topology: tpu7x:2x2x1
jax: 0.10.0
libtpu: 0.0.40
codegen_flags: <defaults>
</compile_context>

<pallas_src>
import jax
import jax.numpy as jnp
from jax.experimental import pallas as pl
from jax.experimental.pallas import tpu as pltpu


_BUDGET_BYTES = 2 << 20       # ~2 MiB per buffer per grid step
_SMALL_BYTES = 256 << 10      # below this, let XLA fuse the relayout
_LANE = 128


def _transpose_minor_kernel(x_ref, o_ref):
    # x_ref: (bB, tT, tC) VMEM tile ; o_ref: (bB, tC, tT) VMEM tile.
    # Pure XLU transpose of the two minor axes; no arithmetic.
    o_ref[...] = jnp.transpose(x_ref[...], (0, 2, 1))


def _pick_tile(extent, cap, unit=_LANE):
    """Largest legal tile <= cap for an axis of size `extent`.

    Prefers (a) the full extent (always legal), then (b) the largest multiple
    of `unit` <= cap that divides `extent` exactly (no ragged edge blocks),
    then (c) the largest multiple of `unit` <= cap.
    """
    if extent <= cap:
        return extent
    cap_aligned = max(unit, (cap // unit) * unit)
    t = cap_aligned
    while t >= unit:
        if extent % t == 0:
            return t
        t -= unit
    return cap_aligned


def _transpose_last2(x):
    """(B, T, C) -> (B, C, T) via a tiled Pallas kernel (or jnp for tiny x)."""
    B, T, C = x.shape
    itemsize = jnp.dtype(x.dtype).itemsize
    total_bytes = B * T * C * itemsize

    # Fast path: tiny variance-adaptor-sized activations — let XLA fuse the
    # relayout into the consumer instead of materializing through HBM.
    if total_bytes < _SMALL_BYTES:
        return jnp.swapaxes(x, 1, 2)

    per_batch_bytes = T * C * itemsize
    if per_batch_bytes <= _BUDGET_BYTES:
        # Both minor axes at full extent: fully contiguous read and write DMAs.
        tT, tC = T, C
        bB = max(1, min(B, _BUDGET_BYTES // max(per_batch_bytes, 1)))
    else:
        bB = 1
        tC_cap = _BUDGET_BYTES // (T * itemsize)
        if tC_cap >= min(C, _LANE):
            # Keep T (the output lane dim) at full extent; tile C.
            tT = T
            tC = _pick_tile(C, tC_cap)
        else:
            # T alone exceeds the budget: keep tC modest (input-read penalty
            # is cheaper than masked/scattered output stores) and give the
            # rest of the budget to tT, the lane-dense output dim.
            tC = C if C <= 2 * _LANE else _pick_tile(C, 2 * _LANE)
            tT_cap = _BUDGET_BYTES // (tC * itemsize)
            tT = _pick_tile(T, tT_cap)

    # T-block axis is the fastest-varying grid dim -> consecutive steps write
    # adjacent contiguous slabs along the output's last axis.
    grid = (pl.cdiv(B, bB), pl.cdiv(C, tC), pl.cdiv(T, tT))

    # Single-step grid: the kernel would just round-trip HBM with no
    # pipelining and would leave v7x's second TensorCore idle — fall back.
    if grid == (1, 1, 1):
        return jnp.swapaxes(x, 1, 2)

    return pl.pallas_call(
        _transpose_minor_kernel,
        out_shape=jax.ShapeDtypeStruct((B, C, T), x.dtype),
        grid=grid,
        in_specs=[pl.BlockSpec((bB, tT, tC), lambda b, c, t: (b, t, c))],
        out_specs=pl.BlockSpec((bB, tC, tT), lambda b, c, t: (b, c, t)),
        compiler_params=pltpu.CompilerParams(
            dimension_semantics=("parallel", "parallel", "parallel"),
        ),
        cost_estimate=pl.CostEstimate(
            flops=0,
            transcendentals=0,
            bytes_accessed=2 * total_bytes,
        ),
    )(x)


def transpose_pallas(x, dim_1, dim_2):
    """Equivalent of torch.Tensor.transpose(dim_1, dim_2)."""
    ndim = x.ndim
    d1 = dim_1 % ndim
    d2 = dim_2 % ndim
    if d1 == d2:
        return x

    # Minor-axis swap (the variance-adaptor case, Transpose(1, 2) on (B,T,C)).
    if ndim >= 2 and {d1, d2} == {ndim - 2, ndim - 1}:
        lead = x.shape[:-2]
        T, C = x.shape[-2], x.shape[-1]
        batch = 1
        for s in lead:
            batch *= s
        y = _transpose_last2(x.reshape(batch, T, C))
        return y.reshape(lead + (C, T))

    # TODO(synk): transposes involving leading axes are pure index relabeling;
    # fall back to plain JAX so XLA can fold them into consumers.
    return jnp.swapaxes(x, d1, d2)


if __name__ == "__main__":
    key = jax.random.PRNGKey(0)
    k1, k2, k3 = jax.random.split(key, 3)

    # 1) Variance-adaptor-style small activation: (batch, seq, hidden).
    #    Takes the small-shape fast path (XLA fuses the relayout).
    B, T, C = 2, 16, 32
    x = jax.random.normal(k1, (B, T, C), dtype=jnp.float32)
    y = jax.block_until_ready(transpose_pallas(x, 1, 2))
    assert y.shape == (B, C, T), y.shape
    assert y.dtype == x.dtype
    assert bool(jnp.all(y == jnp.swapaxes(x, 1, 2)))

    # 2) Medium f32 activation: exercises the Pallas kernel with full-extent
    #    minor axes and a multi-step (batch-blocked) grid.
    B2, T2, C2 = 2, 1024, 384
    x2 = jax.random.normal(k2, (B2, T2, C2), dtype=jnp.float32)
    y2 = jax.block_until_ready(transpose_pallas(x2, 1, 2))
    assert y2.shape == (B2, C2, T2), y2.shape
    assert bool(jnp.all(y2 == jnp.swapaxes(x2, 1, 2)))

    # 3) bf16 activation large enough to force tiling along C while keeping
    #    the output lane dim (T) at full extent.
    B3, T3, C3 = 1, 2048, 768
    x3 = jax.random.normal(k3, (B3, T3, C3), dtype=jnp.bfloat16)
    y3 = jax.block_until_ready(transpose_pallas(x3, 1, 2))
    assert y3.shape == (B3, C3, T3), y3.shape
    assert bool(jnp.all(y3 == jnp.swapaxes(x3, 1, 2)))

    print("KERNEL_OK")
</pallas_src>

<mosaic_0001>
module attributes {stable_mosaic.version = 11 : i64} {
  func.func @_transpose_minor_kernel(%arg0: i32, %arg1: i32, %arg2: i32, %arg3: memref<1x1024x384xf32, #tpu.memory_space<vmem>>, %arg4: memref<1x384x1024xf32, #tpu.memory_space<vmem>>) attributes {dimension_semantics = [#tpu.dimension_semantics<parallel>, #tpu.dimension_semantics<parallel>, #tpu.dimension_semantics<parallel>], iteration_bounds = array<i64: 2, 1, 1>, scalar_prefetch = 0 : i64, scratch_operands = 0 : i64, tpu.core_type = #tpu.core_type<tc>, window_params = [{transform_indices = @transform_0, window_bounds = array<i64: 1, 1024, 384>}, {transform_indices = @transform_1, window_bounds = array<i64: 1, 384, 1024>}]} {
    %c0 = arith.constant 0 : index
    %c0_0 = arith.constant 0 : index
    %c0_1 = arith.constant 0 : index
    %0 = vector.load %arg3[%c0, %c0_0, %c0_1] : memref<1x1024x384xf32, #tpu.memory_space<vmem>>, vector<1x1024x384xf32>
    %1 = tpu.transpose %0, [0, 2, 1] : vector<1x1024x384xf32> -> vector<1x384x1024xf32>
    %c0_2 = arith.constant 0 : index
    %c0_3 = arith.constant 0 : index
    %c0_4 = arith.constant 0 : index
    %2 = vector.load %arg4[%c0_2, %c0_3, %c0_4] : memref<1x384x1024xf32, #tpu.memory_space<vmem>>, vector<1x384x1024xf32>
    tpu.vector_store %arg4[%c0_2, %c0_3, %c0_4], %1 {strides = array<i32>} : memref<1x384x1024xf32, #tpu.memory_space<vmem>>, vector<1x384x1024xf32>,
    return
  }
  func.func @transform_0(%arg0: i32, %arg1: i32, %arg2: i32) -> (i32, i32, i32) {
    %c0_i32 = arith.constant 0 : i32
    return %arg0, %arg2, %arg1 : i32, i32, i32
  }
  func.func @transform_1(%arg0: i32, %arg1: i32, %arg2: i32) -> (i32, i32, i32) {
    %c0_i32 = arith.constant 0 : i32
    return %arg0, %arg1, %arg2 : i32, i32, i32
  }
}

</mosaic_0001>

<bundles_post_ra>
// kernel: tpu_custom_call.1
= control target key start
LH: loop header
LB: loop body
LE: loop exit
PB: predicated region body
PF: predicated region fallthrough
CT: control target
= control target key end

     0   :  { %6 = vsyncpa [#allocation3], 0  ;;  %s2981_s0 = inlined_call_operand.hbm [shape: f32[2,1024,384], index: 0, kind: input, shape index: {}]   ;;  %s2982_s1 = inlined_call_operand.hbm [shape: f32[2,384,1024], index: 1, kind: output, shape index: {}]  }
   0x1   :  { %8 = vsyncpa [#allocation3 + $0x1], 0 }
   0x2   :  { %9 = vsyncpa [#allocation4], 0 }
   0x3   :  { %11 = vsyncpa [#allocation4 + $0x1], 0  ;;  %s2029_s6 = smov 0   ;;  %s2031_s7 = smov 0  }
   0x4   :  { %s2033_s8 = smov 0   ;;  %s2035_s9 = smov 0  }
   0x5   :  { %s2037_s10 = smov 0   ;;  %s2039_s11 = smov 0  }
   0x6 LB: > { %s1820_s12 = sadd.s32 4294967295, %s2011_s11   ;;  %s1821_s13 = sadd.s32 4294967294, %s2011_s11   ;;  %s2011_s11 = sphi %s2039_s11, %s17_s11   ;;  %s2007_s10 = sphi %s2037_s10, %s2997_s10   ;;  %s2003_s9 = sphi %s2035_s9, %s2996_s9   ;;  %s1999_s8 = sphi %s2033_s8, %s2995_s8   ;;  %s1995_s7 = sphi %s2031_s7, %s2994_s7   ;;  %s1991_s6 = sphi %s2029_s6, %s2993_s6  }
   0x7   : > { %s36_s14 = sadd.s32 1, %s2007_s10  ;;  %s47_s15 = sadd.s32 1, %s1999_s8 }
   0x8   : > { %p38_p0 = scmp.ge.s32.totalorder %s36_s14, 2  ;;  %p54_p1 = scmp.ne.s32.totalorder %s1999_s8, %s1995_s7 }
   0x9   : > { %p55_p2 = scmp.eq.s32.totalorder %s2011_s11, 0  ;;  %p60_p3 = scmp.ne.s32.totalorder %s1995_s7, %s1991_s6 }
   0xa   : > { %s2999_s14 = smov (%p38_p0, %s36_s14), 0  ;;  %p61_p5 = scmp.eq.s32.totalorder %s1820_s12, 0 }
   0xb   : > { %p2070_p4 = por %p55_p2, %p54_p1  ;;  %s40_s17 = ssub.s32 %s2007_s10, %s2999_s14 }
   0xc   : > { %p88_p6 = scmp.eq.s32.totalorder %s1820_s12, 1  ;;  %p45_p7 = scmp.eq.s32.totalorder %s40_s17, 0 }
   0xd   : > { %p2076_p8 = por %p61_p5, %p60_p3  ;;  %p94_p10 = scmp.eq.s32.totalorder %s1821_s13, 1 }
   0xe   : > { %p2080_p9 = por %p88_p6, %p54_p1  ;;  %p1845_p13 = scmp.lt.s32.totalorder %s2011_s11, 2 }
   0xf   : > { %s2085_s20 = scalar_select %p45_p7, %s1999_s8, %s47_s15  }
  0x10   : > { %s2986_s19 = scalar_select %p2080_p9, 1, 0 }
  0x11   : > { %p2087_p11 = por %p94_p10, %p60_p3  ;;  %s114_s22 = sand.u32 1, %s1999_s8  }
  0x12   : > { %s1829_s23 = smul.u32 3072, %s114_s22  ;;  %p2097_p0 = pnand %p1845_p13, %p2070_p4 }
  0x13   : > { %s2987_s21 = scalar_select %p2087_p11, 1, 0 }
  0x14   : > { %s1830_s24 = smul.u32 49152, %s2007_s10  ;;  %s118_s29 = scalar_lea.vmem [#allocation2], %s1829_s23 }
  0x15   : > { %s130_s30 = sshll.u32 %s118_s29, 4  ;;  %s2109_s2 = scalar_lea.sflag [#allocation3], %s114_s22  ;;  %s2106_s30 = int_to_ptr.vmem [resolvable:$true] %s130_s30 }
  0x16   : > { %s2104_s28 = scalar_lea.hbm %s2981_s0, %s1830_s24  ;;  %p1901_p3 = pneg %p2097_p0 }
  0x17   : > { %s1899_s3 = scalar_lea.hbm %s2104_s28, 49152  ;;  %s1904_s12 = scalar_lea.hbm %s2981_s0, 98304 }
  0x18   : > { %p1900_p2 = scmp.ne.s32.totalorder %s2104_s28, %s1899_s3  ;;  %p1905_p6 = scmp.lt.u32.totalorder %s2104_s28, %s2981_s0 }
  0x19   : > { %p1906_p7 = scmp.lt.u32.totalorder %s1904_s12, %s1899_s3  ;;  %p1908_p13 = scmp.lt.u32.totalorder %s1899_s3, %s2104_s28 }
  0x1a   : > { %p1902_p4 = pnand %p1901_p3, %p1900_p2 }
  0x1b   : > { %p1907_p10 = por %p1906_p7, %p1905_p6 }
  0x1c   : > { %p1903_p5 = pneg %p1902_p4 }
  0x1d   : > { %p1909_p12 = por %p1908_p13, %p1907_p10 }
  0x1f   : > { %p1910_p1 = pnand %p1909_p12, %p1903_p5 }
  0x21   : > { %1913 = shalt.err (!%p1910_p1)
}
  0x22   : > { %s1914_s16 = scalar_lea.vmem %s2106_s30, 49152  ;;  %s2013_s17 = smov [#allocation2]  }
  0x23   : > { %p1915_p2 = scmp.ne.s32.totalorder %s2106_s30, %s1914_s16  ;;  %s1919_s22 = sshll.u32 %s2013_s17, 4  ;;  %s1920_s22 = int_to_ptr.vmem [resolvable:$false] %s1919_s22 }
  0x24   : > { %s1921_s23 = scalar_lea.vmem %s1920_s22, 98304  ;;  %p1922_p9 = scmp.lt.s32.totalorder %s2106_s30, %s1920_s22 }
  0x25   : > { %p1917_p4 = pnand %p1915_p2, %p1901_p3  ;;  %p1923_p6 = scmp.lt.s32.totalorder %s1921_s23, %s1914_s16 }
  0x27   : > { %p1918_p11 = pneg %p1917_p4  ;;  %p1924_p7 = por %p1923_p6, %p1922_p9 }
  0x29   : > { %p1925_p10 = pnand %p1924_p7, %p1918_p11 }
  0x2b   : > { %1928 = shalt.err (!%p1925_p10)
}
  0x2c   : > { %s2014_s24 = smov 384   ;;  %s2015_s26 = smov 24  }
  0x2d   : > { %1840 = dma.hbm_to_vmem [thread:$0]  (!%p2097_p0), %s2104_s28, 49152, %s2106_s30, %s2109_s2, %s2014_s24, %s2014_s24, %s2015_s26  }
  0x2e   : > { %p138_p12 = scmp.lt.s32.totalorder %s2011_s11, 3  ;;  %p2989_p1 = scmp.ge.s32.totalorder %s2011_s11, 1 }
  0x30   : > { %p139_p3 = pnand %p2989_p1, %p138_p12 }
  0x31   : > { %s2141_s27 = sand.u32 (!%p139_p3), 1, %s1995_s7  }
  0x32   : > { %142 = sbr.rel (%p139_p3) target bundleno = 967 (0x3c7), region = 24  ;;  %s145_s3 = scalar_lea.sflag (!%p139_p3), [#allocation3], %s2141_s27 }
  0x33   : > { %s1831_s29 = smul.u32 (!%p139_p3), 3072, %s2141_s27 }
  0x35   : > { %s2147_s4 = scalar_lea.vmem (!%p139_p3), [#allocation2], %s1831_s29 }
  0x39   : > { %1982 = dma.done.wait (%p2076_p8), %s145_s3, 49152  }
  0x3a   : > { %1984 = vsyncadd (%p2076_p8), %s145_s3, 4294918144  ;;  %v172_v0 = vld [vmem:[%s2147_s4 + $0x8] sm:$0xff]  ;;  %v171_v1 = vld [vmem:[%s2147_s4] sm:$0xff]  ;;  %s2221_s18 = scalar_lea.vmem [#allocation5], %s1831_s29  ;;  %s1832_s25 = smul.u32 49152, %s2003_s9 }
  0x3b   : > { %587 = vxpose.xlu1.b32.start [1/16] %v172_v0, 128  ;;  %555 = vxpose.xlu0.b32.start [1/16] %v171_v1, 128  ;;  %v175_v2 = vld [vmem:[%s2147_s4 + $0x20] sm:$0xff]  ;;  %v174_v3 = vld [vmem:[%s2147_s4 + $0x18] sm:$0xff]  ;;  %v177_v5 = vld [vmem:[%s2147_s4 + $0x30] sm:$0xff]  ;;  %s1726_s28 = sshll.u32 %s2221_s18, 4  ;;  %s1708_s9 = scalar_lea.sflag [#allocation4], %s2141_s27  ;;  %s2930_s28 = int_to_ptr.vmem [resolvable:$true] %s1726_s28 }
  0x3c   : > { %v178_v4 = vld [vmem:[%s2147_s4 + $0x38] sm:$0xff]  ;;  %v181_v6 = vld [vmem:[%s2147_s4 + $0x50] sm:$0xff]  ;;  %v180_v7 = vld [vmem:[%s2147_s4 + $0x48] sm:$0xff]  ;;  %s2928_s5 = scalar_lea.hbm %s2982_s1, %s1832_s25  ;;  %s1929_s12 = scalar_lea.vmem %s2930_s28, 49152 }
  0x3d   : > { %v184_v8 = vld [vmem:[%s2147_s4 + $0x68] sm:$0xff]  ;;  %v183_v9 = vld [vmem:[%s2147_s4 + $0x60] sm:$0xff]  ;;  %v186_v11 = vld [vmem:[%s2147_s4 + $0x78] sm:$0xff]  ;;  %p1930_p8 = scmp.ne.s32.totalorder %s2930_s28, %s1929_s12  ;;  %p2990_p9 = scmp.ne.s32.totalorder %s2986_s19, 0 }
  0x3e   : > { %v187_v10 = vld [vmem:[%s2147_s4 + $0x80] sm:$0xff]  ;;  %v190_v12 = vld [vmem:[%s2147_s4 + $0x98] sm:$0xff]  ;;  %v189_v13 = vld [vmem:[%s2147_s4 + $0x90] sm:$0xff]  ;;  %s2016_s13 = smov [#allocation5]  }
  0x3f   : > { %588 = vxpose.xlu1.b32.cont [2/16] %v175_v2, 128  ;;  %556 = vxpose.xlu0.b32.cont [2/16] %v174_v3, 128  ;;  %v193_v14 = vld [vmem:[%s2147_s4 + $0xb0] sm:$0xff]  ;;  %v192_v15 = vld [vmem:[%s2147_s4 + $0xa8] sm:$0xff]  ;;  %v195_v17 = vld [vmem:[%s2147_s4 + $0xc0] sm:$0xff]  ;;  %p1931_p11 = pnand %p1930_p8, %p2990_p9  ;;  %s1933_s15 = sshll.u32 %s2016_s13, 4  ;;  %s1934_s15 = int_to_ptr.vmem [resolvable:$false] %s1933_s15 }
  0x40   : > { %v196_v16 = vld [vmem:[%s2147_s4 + $0xc8] sm:$0xff]  ;;  %v199_v18 = vld [vmem:[%s2147_s4 + $0xe0] sm:$0xff]  ;;  %v198_v19 = vld [vmem:[%s2147_s4 + $0xd8] sm:$0xff]  ;;  %s1935_s16 = scalar_lea.vmem %s1934_s15, 98304  ;;  %p1936_p5 = scmp.lt.s32.totalorder %s2930_s28, %s1934_s15 }
  0x41   : > { %v202_v20 = vld [vmem:[%s2147_s4 + $0xf8] sm:$0xff]  ;;  %v201_v21 = vld [vmem:[%s2147_s4 + $0xf0] sm:$0xff]  ;;  %v204_v23 = vld [vmem:[%s2147_s4 + $0x108] sm:$0xff]  ;;  %p1932_p0 = pneg %p1931_p11  ;;  %p1937_p13 = scmp.lt.s32.totalorder %s1935_s16, %s1929_s12 }
  0x42   : > { %v205_v22 = vld [vmem:[%s2147_s4 + $0x110] sm:$0xff]  ;;  %v208_v24 = vld [vmem:[%s2147_s4 + $0x128] sm:$0xff]  ;;  %v207_v25 = vld [vmem:[%s2147_s4 + $0x120] sm:$0xff] }
  0x43   : > { %589 = vxpose.xlu1.b32.cont [3/16] %v178_v4, 128  ;;  %557 = vxpose.xlu0.b32.cont [3/16] %v177_v5, 128  ;;  %v211_v26 = vld [vmem:[%s2147_s4 + $0x140] sm:$0xff]  ;;  %v210_v27 = vld [vmem:[%s2147_s4 + $0x138] sm:$0xff]  ;;  %v213_v29 = vld [vmem:[%s2147_s4 + $0x150] sm:$0xff]  ;;  %p1938_p2 = por %p1937_p13, %p1936_p5 }
  0x44   : > { %v214_v28 = vld [vmem:[%s2147_s4 + $0x158] sm:$0xff]  ;;  %v217_v30 = vld [vmem:[%s2147_s4 + $0x170] sm:$0xff]  ;;  %v216_v31 = vld [vmem:[%s2147_s4 + $0x168] sm:$0xff] }
  0x45   : > { %v219_v32 = vld [vmem:[%s2147_s4 + $0x180] sm:$0xff]  ;;  %v173_v33 = vld [vmem:[%s2147_s4 + $0x10] sm:$0xff]  ;;  %v222_v34 = vld [vmem:[%s2147_s4 + $0x198] sm:$0xff]  ;;  %p1939_p4 = pnand %p1938_p2, %p1932_p0 }
  0x46   : > { %v176_v35 = vld [vmem:[%s2147_s4 + $0x28] sm:$0xff]  ;;  %v225_v36 = vld [vmem:[%s2147_s4 + $0x1b0] sm:$0xff]  ;;  %v179_v37 = vld [vmem:[%s2147_s4 + $0x40] sm:$0xff] }
  0x47   : > { %590 = vxpose.xlu1.b32.cont [4/16] %v181_v6, 128  ;;  %558 = vxpose.xlu0.b32.cont [4/16] %v180_v7, 128  ;;  %v228_v38 = vld [vmem:[%s2147_s4 + $0x1c8] sm:$0xff]  ;;  %v182_v39 = vld [vmem:[%s2147_s4 + $0x58] sm:$0xff]  ;;  %v231_v40 = vld [vmem:[%s2147_s4 + $0x1e0] sm:$0xff] }
  0x48   : > { %v185_v41 = vld [vmem:[%s2147_s4 + $0x70] sm:$0xff]  ;;  %v234_v42 = vld [vmem:[%s2147_s4 + $0x1f8] sm:$0xff]  ;;  %v188_v43 = vld [vmem:[%s2147_s4 + $0x88] sm:$0xff] }
  0x49   : > { %v237_v44 = vld [vmem:[%s2147_s4 + $0x210] sm:$0xff]  ;;  %v191_v45 = vld [vmem:[%s2147_s4 + $0xa0] sm:$0xff]  ;;  %v240_v46 = vld [vmem:[%s2147_s4 + $0x228] sm:$0xff] }
  0x4a   : > { %v194_v47 = vld [vmem:[%s2147_s4 + $0xb8] sm:$0xff]  ;;  %v243_v48 = vld [vmem:[%s2147_s4 + $0x240] sm:$0xff]  ;;  %v197_v49 = vld [vmem:[%s2147_s4 + $0xd0] sm:$0xff] }
  0x4b   : > { %591 = vxpose.xlu1.b32.cont [5/16] %v184_v8, 128  ;;  %559 = vxpose.xlu0.b32.cont [5/16] %v183_v9, 128  ;;  %v246_v50 = vld [vmem:[%s2147_s4 + $0x258] sm:$0xff]  ;;  %v200_v51 = vld [vmem:[%s2147_s4 + $0xe8] sm:$0xff]  ;;  %v249_v52 = vld [vmem:[%s2147_s4 + $0x270] sm:$0xff] }
  0x4c   : > { %v203_v53 = vld [vmem:[%s2147_s4 + $0x100] sm:$0xff]  ;;  %v252_v54 = vld [vmem:[%s2147_s4 + $0x288] sm:$0xff]  ;;  %v206_v55 = vld [vmem:[%s2147_s4 + $0x118] sm:$0xff] }
  0x4d   : > { %v255_v56 = vld [vmem:[%s2147_s4 + $0x2a0] sm:$0xff]  ;;  %v209_v57 = vld [vmem:[%s2147_s4 + $0x130] sm:$0xff]  ;;  %v258_v58 = vld [vmem:[%s2147_s4 + $0x2b8] sm:$0xff] }
  0x4e   : > { %v212_v59 = vld [vmem:[%s2147_s4 + $0x148] sm:$0xff]  ;;  %v261_v60 = vld [vmem:[%s2147_s4 + $0x2d0] sm:$0xff]  ;;  %v215_v61 = vld [vmem:[%s2147_s4 + $0x160] sm:$0xff] }
  0x4f   : > { %592 = vxpose.xlu1.b32.cont [6/16] %v187_v10, 128  ;;  %560 = vxpose.xlu0.b32.cont [6/16] %v186_v11, 128  ;;  %v264_v62 = vld [vmem:[%s2147_s4 + $0x2e8] sm:$0xff]  ;;  %v218_v63 = vld [vmem:[%s2147_s4 + $0x178] sm:$0xff]  ;;  %v221_v0 = vld [vmem:[%s2147_s4 + $0x190] sm:$0xff] }
  0x50   : > { %v220_v1 = vld [vmem:[%s2147_s4 + $0x188] sm:$0xff]  ;;  %v223_v5 = vld [vmem:[%s2147_s4 + $0x1a0] sm:$0xff]  ;;  %v226_v9 = vld [vmem:[%s2147_s4 + $0x1b8] sm:$0xff] }
  0x51   : > { %v224_v4 = vld [vmem:[%s2147_s4 + $0x1a8] sm:$0xff]  ;;  %v227_v8 = vld [vmem:[%s2147_s4 + $0x1c0] sm:$0xff] }
  0x53   : > { %593 = vxpose.xlu1.b32.cont [7/16] %v190_v12, 128  ;;  %561 = vxpose.xlu0.b32.cont [7/16] %v189_v13, 128  ;;  %v230_v12 = vld [vmem:[%s2147_s4 + $0x1d8] sm:$0xff]  ;;  %v229_v13 = vld [vmem:[%s2147_s4 + $0x1d0] sm:$0xff] }
  0x57   : > { %594 = vxpose.xlu1.b32.cont [8/16] %v193_v14, 128  ;;  %562 = vxpose.xlu0.b32.cont [8/16] %v192_v15, 128 }
  0x5b   : > { %595 = vxpose.xlu1.b32.cont [9/16] %v196_v16, 128  ;;  %563 = vxpose.xlu0.b32.cont [9/16] %v195_v17, 128  ;;  %v233_v16 = vld [vmem:[%s2147_s4 + $0x1f0] sm:$0xff]  ;;  %v232_v17 = vld [vmem:[%s2147_s4 + $0x1e8] sm:$0xff] }
  0x5f   : > { %596 = vxpose.xlu1.b32.cont [10/16] %v199_v18, 128  ;;  %564 = vxpose.xlu0.b32.cont [10/16] %v198_v19, 128 }
  0x63   : > { %597 = vxpose.xlu1.b32.cont [11/16] %v202_v20, 128  ;;  %565 = vxpose.xlu0.b32.cont [11/16] %v201_v21, 128  ;;  %v236_v20 = vld [vmem:[%s2147_s4 + $0x208] sm:$0xff]  ;;  %v235_v21 = vld [vmem:[%s2147_s4 + $0x200] sm:$0xff] }
  0x67   : > { %598 = vxpose.xlu1.b32.cont [12/16] %v205_v22, 128  ;;  %566 = vxpose.xlu0.b32.cont [12/16] %v204_v23, 128 }
  0x6b   : > { %599 = vxpose.xlu1.b32.cont [13/16] %v208_v24, 128  ;;  %567 = vxpose.xlu0.b32.cont [13/16] %v207_v25, 128  ;;  %v239_v24 = vld [vmem:[%s2147_s4 + $0x220] sm:$0xff]  ;;  %v238_v25 = vld [vmem:[%s2147_s4 + $0x218] sm:$0xff] }
  0x6f   : > { %600 = vxpose.xlu1.b32.cont [14/16] %v211_v26, 128  ;;  %568 = vxpose.xlu0.b32.cont [14/16] %v210_v27, 128 }
  0x73   : > { %601 = vxpose.xlu1.b32.cont [15/16] %v214_v28, 128  ;;  %569 = vxpose.xlu0.b32.cont [15/16] %v213_v29, 128  ;;  %v242_v28 = vld [vmem:[%s2147_s4 + $0x238] sm:$0xff]  ;;  %v241_v29 = vld [vmem:[%s2147_s4 + $0x230] sm:$0xff] }
  0x77   : > { %602 = vxpose.xlu1.b32.end [16/16] %v217_v30, 128  ;;  %570 = vxpose.xlu0.b32.end [16/16] %v216_v31, 128 }
  0x7b   : > { %651 = vxpose.xlu1.b32.start [1/16] %v219_v32, 128  ;;  %619 = vxpose.xlu0.b32.start [1/16] %v173_v33, 128  ;;  %v245_v32 = vld [vmem:[%s2147_s4 + $0x250] sm:$0xff]  ;;  %v244_v33 = vld [vmem:[%s2147_s4 + $0x248] sm:$0xff] }
  0x7f   : > { %652 = vxpose.xlu1.b32.cont [2/16] %v222_v34, 128  ;;  %620 = vxpose.xlu0.b32.cont [2/16] %v176_v35, 128 }
  0x83   : > { %653 = vxpose.xlu1.b32.cont [3/16] %v225_v36, 128  ;;  %621 = vxpose.xlu0.b32.cont [3/16] %v179_v37, 128  ;;  %v248_v36 = vld [vmem:[%s2147_s4 + $0x268] sm:$0xff]  ;;  %v247_v37 = vld [vmem:[%s2147_s4 + $0x260] sm:$0xff] }
  0x87   : > { %654 = vxpose.xlu1.b32.cont [4/16] %v228_v38, 128  ;;  %622 = vxpose.xlu0.b32.cont [4/16] %v182_v39, 128 }
  0x8b   : > { %655 = vxpose.xlu1.b32.cont [5/16] %v231_v40, 128  ;;  %623 = vxpose.xlu0.b32.cont [5/16] %v185_v41, 128  ;;  %v251_v40 = vld [vmem:[%s2147_s4 + $0x280] sm:$0xff]  ;;  %v250_v41 = vld [vmem:[%s2147_s4 + $0x278] sm:$0xff] }
  0x8f   : > { %656 = vxpose.xlu1.b32.cont [6/16] %v234_v42, 128  ;;  %624 = vxpose.xlu0.b32.cont [6/16] %v188_v43, 128 }
  0x93   : > { %657 = vxpose.xlu1.b32.cont [7/16] %v237_v44, 128  ;;  %625 = vxpose.xlu0.b32.cont [7/16] %v191_v45, 128  ;;  %v254_v44 = vld [vmem:[%s2147_s4 + $0x298] sm:$0xff]  ;;  %v253_v45 = vld [vmem:[%s2147_s4 + $0x290] sm:$0xff] }
  0x97   : > { %658 = vxpose.xlu1.b32.cont [8/16] %v240_v46, 128  ;;  %626 = vxpose.xlu0.b32.cont [8/16] %v194_v47, 128 }
  0x9b   : > { %659 = vxpose.xlu1.b32.cont [9/16] %v243_v48, 128  ;;  %627 = vxpose.xlu0.b32.cont [9/16] %v197_v49, 128  ;;  %v257_v48 = vld [vmem:[%s2147_s4 + $0x2b0] sm:$0xff]  ;;  %v256_v49 = vld [vmem:[%s2147_s4 + $0x2a8] sm:$0xff] }
  0x9f   : > { %660 = vxpose.xlu1.b32.cont [10/16] %v246_v50, 128  ;;  %628 = vxpose.xlu0.b32.cont [10/16] %v200_v51, 128 }
  0xa3   : > { %661 = vxpose.xlu1.b32.cont [11/16] %v249_v52, 128  ;;  %629 = vxpose.xlu0.b32.cont [11/16] %v203_v53, 128  ;;  %v260_v52 = vld [vmem:[%s2147_s4 + $0x2c8] sm:$0xff]  ;;  %v259_v53 = vld [vmem:[%s2147_s4 + $0x2c0] sm:$0xff] }
  0xa7   : > { %662 = vxpose.xlu1.b32.cont [12/16] %v252_v54, 128  ;;  %630 = vxpose.xlu0.b32.cont [12/16] %v206_v55, 128 }
  0xab   : > { %663 = vxpose.xlu1.b32.cont [13/16] %v255_v56, 128  ;;  %631 = vxpose.xlu0.b32.cont [13/16] %v209_v57, 128  ;;  %v263_v56 = vld [vmem:[%s2147_s4 + $0x2e0] sm:$0xff]  ;;  %v262_v57 = vld [vmem:[%s2147_s4 + $0x2d8] sm:$0xff] }
  0xaf   : > { %664 = vxpose.xlu1.b32.cont [14/16] %v258_v58, 128  ;;  %632 = vxpose.xlu0.b32.cont [14/16] %v212_v59, 128 }
  0xb3   : > { %665 = vxpose.xlu1.b32.cont [15/16] %v261_v60, 128  ;;  %633 = vxpose.xlu0.b32.cont [15/16] %v215_v61, 128  ;;  %v266_v60 = vld [vmem:[%s2147_s4 + $0x2f8] sm:$0xff]  ;;  %v265_v61 = vld [vmem:[%s2147_s4 + $0x2f0] sm:$0xff] }
  0xb7   : > { %666 = vxpose.xlu1.b32.end [16/16] %v264_v62, 128  ;;  %634 = vxpose.xlu0.b32.end [16/16] %v218_v63, 128 }
  0xbb   : > { %715 = vxpose.xlu1.b32.start [1/16] %v221_v0, 128  ;;  %v603_v2 = vpop.trf.xlu1  ;;  %683 = vxpose.xlu0.b32.start [1/16] %v220_v1, 128  ;;  %v571_v3 = vpop.trf.xlu0  ;;  %v268_v0 = vld [vmem:[%s2147_s4 + $0x308] sm:$0xff]  ;;  %v267_v1 = vld [vmem:[%s2147_s4 + $0x300] sm:$0xff] }
  0xbc   : > { %1451 = vst [vmem:[%s2221_s18 + $0x400] sm:$0xff] %v603_v2  ;;  %1323 = vst [vmem:[%s2221_s18] sm:$0xff] %v571_v3 }
  0xbf   : > { %716 = vxpose.xlu1.b32.cont [2/16] %v224_v4, 128  ;;  %v604_v6 = vpop.trf.xlu1  ;;  %684 = vxpose.xlu0.b32.cont [2/16] %v223_v5, 128  ;;  %v572_v7 = vpop.trf.xlu0  ;;  %v271_v4 = vld [vmem:[%s2147_s4 + $0x320] sm:$0xff]  ;;  %v270_v5 = vld [vmem:[%s2147_s4 + $0x318] sm:$0xff] }
  0xc0   : > { %1459 = vst [vmem:[%s2221_s18 + $0x440] sm:$0xff] %v604_v6  ;;  %1331 = vst [vmem:[%s2221_s18 + $0x40] sm:$0xff] %v572_v7 }
  0xc3   : > { %717 = vxpose.xlu1.b32.cont [3/16] %v227_v8, 128  ;;  %v605_v10 = vpop.trf.xlu1  ;;  %685 = vxpose.xlu0.b32.cont [3/16] %v226_v9, 128  ;;  %v573_v11 = vpop.trf.xlu0  ;;  %v274_v8 = vld [vmem:[%s2147_s4 + $0x338] sm:$0xff]  ;;  %v273_v9 = vld [vmem:[%s2147_s4 + $0x330] sm:$0xff] }
  0xc4   : > { %1467 = vst [vmem:[%s2221_s18 + $0x480] sm:$0xff] %v605_v10  ;;  %1339 = vst [vmem:[%s2221_s18 + $0x80] sm:$0xff] %v573_v11 }
  0xc7   : > { %718 = vxpose.xlu1.b32.cont [4/16] %v230_v12, 128  ;;  %v606_v14 = vpop.trf.xlu1  ;;  %686 = vxpose.xlu0.b32.cont [4/16] %v229_v13, 128  ;;  %v574_v15 = vpop.trf.xlu0  ;;  %v277_v12 = vld [vmem:[%s2147_s4 + $0x350] sm:$0xff]  ;;  %v276_v13 = vld [vmem:[%s2147_s4 + $0x348] sm:$0xff] }
  0xc8   : > { %1475 = vst [vmem:[%s2221_s18 + $0x4c0] sm:$0xff] %v606_v14  ;;  %1347 = vst [vmem:[%s2221_s18 + $0xc0] sm:$0xff] %v574_v15 }
  0xcb   : > { %719 = vxpose.xlu1.b32.cont [5/16] %v233_v16, 128  ;;  %v607_v18 = vpop.trf.xlu1  ;;  %687 = vxpose.xlu0.b32.cont [5/16] %v232_v17, 128  ;;  %v575_v19 = vpop.trf.xlu0  ;;  %v280_v16 = vld [vmem:[%s2147_s4 + $0x368] sm:$0xff]  ;;  %v279_v17 = vld [vmem:[%s2147_s4 + $0x360] sm:$0xff] }
  0xcc   : > { %1483 = vst [vmem:[%s2221_s18 + $0x500] sm:$0xff] %v607_v18  ;;  %1355 = vst [vmem:[%s2221_s18 + $0x100] sm:$0xff] %v575_v19 }
  0xcf   : > { %720 = vxpose.xlu1.b32.cont [6/16] %v236_v20, 128  ;;  %v608_v22 = vpop.trf.xlu1  ;;  %688 = vxpose.xlu0.b32.cont [6/16] %v235_v21, 128  ;;  %v576_v23 = vpop.trf.xlu0  ;;  %v283_v20 = vld [vmem:[%s2147_s4 + $0x380] sm:$0xff]  ;;  %v282_v21 = vld [vmem:[%s2147_s4 + $0x378] sm:$0xff] }
  0xd0   : > { %1491 = vst [vmem:[%s2221_s18 + $0x540] sm:$0xff] %v608_v22  ;;  %1363 = vst [vmem:[%s2221_s18 + $0x140] sm:$0xff] %v576_v23 }
  0xd3   : > { %721 = vxpose.xlu1.b32.cont [7/16] %v239_v24, 128  ;;  %v609_v26 = vpop.trf.xlu1  ;;  %689 = vxpose.xlu0.b32.cont [7/16] %v238_v25, 128  ;;  %v577_v27 = vpop.trf.xlu0  ;;  %v286_v24 = vld [vmem:[%s2147_s4 + $0x398] sm:$0xff]  ;;  %v285_v25 = vld [vmem:[%s2147_s4 + $0x390] sm:$0xff] }
  0xd4   : > { %1499 = vst [vmem:[%s2221_s18 + $0x580] sm:$0xff] %v609_v26  ;;  %1371 = vst [vmem:[%s2221_s18 + $0x180] sm:$0xff] %v577_v27 }
  0xd7   : > { %722 = vxpose.xlu1.b32.cont [8/16] %v242_v28, 128  ;;  %v610_v30 = vpop.trf.xlu1  ;;  %690 = vxpose.xlu0.b32.cont [8/16] %v241_v29, 128  ;;  %v578_v31 = vpop.trf.xlu0  ;;  %v289_v28 = vld [vmem:[%s2147_s4 + $0x3b0] sm:$0xff]  ;;  %v288_v29 = vld [vmem:[%s2147_s4 + $0x3a8] sm:$0xff] }
  0xd8   : > { %1507 = vst [vmem:[%s2221_s18 + $0x5c0] sm:$0xff] %v610_v30  ;;  %1379 = vst [vmem:[%s2221_s18 + $0x1c0] sm:$0xff] %v578_v31 }
  0xdb   : > { %723 = vxpose.xlu1.b32.cont [9/16] %v245_v32, 128  ;;  %v611_v34 = vpop.trf.xlu1  ;;  %691 = vxpose.xlu0.b32.cont [9/16] %v244_v33, 128  ;;  %v579_v35 = vpop.trf.xlu0  ;;  %v292_v32 = vld [vmem:[%s2147_s4 + $0x3c8] sm:$0xff]  ;;  %v291_v33 = vld [vmem:[%s2147_s4 + $0x3c0] sm:$0xff] }
  0xdc   : > { %1515 = vst [vmem:[%s2221_s18 + $0x600] sm:$0xff] %v611_v34  ;;  %1387 = vst [vmem:[%s2221_s18 + $0x200] sm:$0xff] %v579_v35 }
  0xdf   : > { %724 = vxpose.xlu1.b32.cont [10/16] %v248_v36, 128  ;;  %v612_v38 = vpop.trf.xlu1  ;;  %692 = vxpose.xlu0.b32.cont [10/16] %v247_v37, 128  ;;  %v580_v39 = vpop.trf.xlu0  ;;  %v295_v36 = vld [vmem:[%s2147_s4 + $0x3e0] sm:$0xff]  ;;  %v294_v37 = vld [vmem:[%s2147_s4 + $0x3d8] sm:$0xff] }
  0xe0   : > { %1523 = vst [vmem:[%s2221_s18 + $0x640] sm:$0xff] %v612_v38  ;;  %1395 = vst [vmem:[%s2221_s18 + $0x240] sm:$0xff] %v580_v39 }
  0xe3   : > { %725 = vxpose.xlu1.b32.cont [11/16] %v251_v40, 128  ;;  %v613_v42 = vpop.trf.xlu1  ;;  %693 = vxpose.xlu0.b32.cont [11/16] %v250_v41, 128  ;;  %v581_v43 = vpop.trf.xlu0  ;;  %v298_v40 = vld [vmem:[%s2147_s4 + $0x3f8] sm:$0xff]  ;;  %v297_v41 = vld [vmem:[%s2147_s4 + $0x3f0] sm:$0xff] }
  0xe4   : > { %1531 = vst [vmem:[%s2221_s18 + $0x680] sm:$0xff] %v613_v42  ;;  %1403 = vst [vmem:[%s2221_s18 + $0x280] sm:$0xff] %v581_v43 }
  0xe7   : > { %726 = vxpose.xlu1.b32.cont [12/16] %v254_v44, 128  ;;  %v614_v46 = vpop.trf.xlu1  ;;  %694 = vxpose.xlu0.b32.cont [12/16] %v253_v45, 128  ;;  %v582_v47 = vpop.trf.xlu0  ;;  %v301_v44 = vld [vmem:[%s2147_s4 + $0x410] sm:$0xff]  ;;  %v300_v45 = vld [vmem:[%s2147_s4 + $0x408] sm:$0xff] }
  0xe8   : > { %1539 = vst [vmem:[%s2221_s18 + $0x6c0] sm:$0xff] %v614_v46  ;;  %1411 = vst [vmem:[%s2221_s18 + $0x2c0] sm:$0xff] %v582_v47 }
  0xeb   : > { %727 = vxpose.xlu1.b32.cont [13/16] %v257_v48, 128  ;;  %v615_v50 = vpop.trf.xlu1  ;;  %695 = vxpose.xlu0.b32.cont [13/16] %v256_v49, 128  ;;  %v583_v51 = vpop.trf.xlu0  ;;  %v304_v48 = vld [vmem:[%s2147_s4 + $0x428] sm:$0xff]  ;;  %v303_v49 = vld [vmem:[%s2147_s4 + $0x420] sm:$0xff] }
  0xec   : > { %1547 = vst [vmem:[%s2221_s18 + $0x700] sm:$0xff] %v615_v50  ;;  %1419 = vst [vmem:[%s2221_s18 + $0x300] sm:$0xff] %v583_v51 }
  0xef   : > { %728 = vxpose.xlu1.b32.cont [14/16] %v260_v52, 128  ;;  %v616_v54 = vpop.trf.xlu1  ;;  %696 = vxpose.xlu0.b32.cont [14/16] %v259_v53, 128  ;;  %v584_v55 = vpop.trf.xlu0  ;;  %v307_v52 = vld [vmem:[%s2147_s4 + $0x440] sm:$0xff]  ;;  %v306_v53 = vld [vmem:[%s2147_s4 + $0x438] sm:$0xff] }
  0xf0   : > { %1555 = vst [vmem:[%s2221_s18 + $0x740] sm:$0xff] %v616_v54  ;;  %1427 = vst [vmem:[%s2221_s18 + $0x340] sm:$0xff] %v584_v55 }
  0xf3   : > { %729 = vxpose.xlu1.b32.cont [15/16] %v263_v56, 128  ;;  %v617_v58 = vpop.trf.xlu1  ;;  %697 = vxpose.xlu0.b32.cont [15/16] %v262_v57, 128  ;;  %v585_v59 = vpop.trf.xlu0  ;;  %v310_v56 = vld [vmem:[%s2147_s4 + $0x458] sm:$0xff]  ;;  %v309_v57 = vld [vmem:[%s2147_s4 + $0x450] sm:$0xff] }
  0xf4   : > { %1563 = vst [vmem:[%s2221_s18 + $0x780] sm:$0xff] %v617_v58  ;;  %1435 = vst [vmem:[%s2221_s18 + $0x380] sm:$0xff] %v585_v59 }
  0xf7   : > { %730 = vxpose.xlu1.b32.end [16/16] %v266_v60, 128  ;;  %v618_v62 = vpop.trf.xlu1  ;;  %698 = vxpose.xlu0.b32.end [16/16] %v265_v61, 128  ;;  %v586_v63 = vpop.trf.xlu0  ;;  %v313_v60 = vld [vmem:[%s2147_s4 + $0x470] sm:$0xff]  ;;  %v312_v61 = vld [vmem:[%s2147_s4 + $0x468] sm:$0xff] }
  0xf8   : > { %1571 = vst [vmem:[%s2221_s18 + $0x7c0] sm:$0xff] %v618_v62  ;;  %1443 = vst [vmem:[%s2221_s18 + $0x3c0] sm:$0xff] %v586_v63 }
  0xfb   : > { %779 = vxpose.xlu1.b32.start [1/16] %v268_v0, 128  ;;  %v667_v2 = vpop.trf.xlu1  ;;  %747 = vxpose.xlu0.b32.start [1/16] %v267_v1, 128  ;;  %v635_v3 = vpop.trf.xlu0  ;;  %v315_v0 = vld [vmem:[%s2147_s4 + $0x480] sm:$0xff]  ;;  %v269_v1 = vld [vmem:[%s2147_s4 + $0x310] sm:$0xff] }
  0xfc   : > { %1324 = vst [vmem:[%s2221_s18 + $0x8] sm:$0xff] %v667_v2  ;;  %1579 = vst [vmem:[%s2221_s18 + $0x800] sm:$0xff] %v635_v3 }
  0xff   : > { %780 = vxpose.xlu1.b32.cont [2/16] %v271_v4, 128  ;;  %v668_v6 = vpop.trf.xlu1  ;;  %748 = vxpose.xlu0.b32.cont [2/16] %v270_v5, 128  ;;  %v636_v7 = vpop.trf.xlu0  ;;  %v318_v4 = vld [vmem:[%s2147_s4 + $0x498] sm:$0xff]  ;;  %v272_v5 = vld [vmem:[%s2147_s4 + $0x328] sm:$0xff] }
 0x100   : > { %1332 = vst [vmem:[%s2221_s18 + $0x48] sm:$0xff] %v668_v6  ;;  %1587 = vst [vmem:[%s2221_s18 + $0x840] sm:$0xff] %v636_v7 }
 0x103   : > { %781 = vxpose.xlu1.b32.cont [3/16] %v274_v8, 128  ;;  %v669_v10 = vpop.trf.xlu1  ;;  %749 = vxpose.xlu0.b32.cont [3/16] %v273_v9, 128  ;;  %v637_v11 = vpop.trf.xlu0  ;;  %v321_v8 = vld [vmem:[%s2147_s4 + $0x4b0] sm:$0xff]  ;;  %v275_v9 = vld [vmem:[%s2147_s4 + $0x340] sm:$0xff] }
 0x104   : > { %1340 = vst [vmem:[%s2221_s18 + $0x88] sm:$0xff] %v669_v10  ;;  %1595 = vst [vmem:[%s2221_s18 + $0x880] sm:$0xff] %v637_v11 }
 0x107   : > { %782 = vxpose.xlu1.b32.cont [4/16] %v277_v12, 128  ;;  %v670_v14 = vpop.trf.xlu1  ;;  %750 = vxpose.xlu0.b32.cont [4/16] %v276_v13, 128  ;;  %v638_v15 = vpop.trf.xlu0  ;;  %v324_v12 = vld [vmem:[%s2147_s4 + $0x4c8] sm:$0xff]  ;;  %v278_v13 = vld [vmem:[%s2147_s4 + $0x358] sm:$0xff] }
 0x108   : > { %1348 = vst [vmem:[%s2221_s18 + $0xc8] sm:$0xff] %v670_v14  ;;  %1603 = vst [vmem:[%s2221_s18 + $0x8c0] sm:$0xff] %v638_v15 }
 0x10b   : > { %783 = vxpose.xlu1.b32.cont [5/16] %v280_v16, 128  ;;  %v671_v18 = vpop.trf.xlu1  ;;  %751 = vxpose.xlu0.b32.cont [5/16] %v279_v17, 128  ;;  %v639_v19 = vpop.trf.xlu0  ;;  %v327_v16 = vld [vmem:[%s2147_s4 + $0x4e0] sm:$0xff]  ;;  %v281_v17 = vld [vmem:[%s2147_s4 + $0x370] sm:$0xff] }
 0x10c   : > { %1356 = vst [vmem:[%s2221_s18 + $0x108] sm:$0xff] %v671_v18  ;;  %1611 = vst [vmem:[%s2221_s18 + $0x900] sm:$0xff] %v639_v19 }
 0x10f   : > { %784 = vxpose.xlu1.b32.cont [6/16] %v283_v20, 128  ;;  %v672_v22 = vpop.trf.xlu1  ;;  %752 = vxpose.xlu0.b32.cont [6/16] %v282_v21, 128  ;;  %v640_v23 = vpop.trf.xlu0  ;;  %v330_v20 = vld [vmem:[%s2147_s4 + $0x4f8] sm:$0xff]  ;;  %v284_v21 = vld [vmem:[%s2147_s4 + $0x388] sm:$0xff] }
 0x110   : > { %1364 = vst [vmem:[%s2221_s18 + $0x148] sm:$0xff] %v672_v22  ;;  %1619 = vst [vmem:[%s2221_s18 + $0x940] sm:$0xff] %v640_v23 }
 0x113   : > { %785 = vxpose.xlu1.b32.cont [7/16] %v286_v24, 128  ;;  %v673_v26 = vpop.trf.xlu1  ;;  %753 = vxpose.xlu0.b32.cont [7/16] %v285_v25, 128  ;;  %v641_v27 = vpop.trf.xlu0  ;;  %v333_v24 = vld [vmem:[%s2147_s4 + $0x510] sm:$0xff]  ;;  %v287_v25 = vld [vmem:[%s2147_s4 + $0x3a0] sm:$0xff] }
 0x114   : > { %1372 = vst [vmem:[%s2221_s18 + $0x188] sm:$0xff] %v673_v26  ;;  %1627 = vst [vmem:[%s2221_s18 + $0x980] sm:$0xff] %v641_v27 }
 0x117   : > { %786 = vxpose.xlu1.b32.cont [8/16] %v289_v28, 128  ;;  %v674_v30 = vpop.trf.xlu1  ;;  %754 = vxpose.xlu0.b32.cont [8/16] %v288_v29, 128  ;;  %v642_v31 = vpop.trf.xlu0  ;;  %v336_v28 = vld [vmem:[%s2147_s4 + $0x528] sm:$0xff]  ;;  %v290_v29 = vld [vmem:[%s2147_s4 + $0x3b8] sm:$0xff] }
 0x118   : > { %1380 = vst [vmem:[%s2221_s18 + $0x1c8] sm:$0xff] %v674_v30  ;;  %1635 = vst [vmem:[%s2221_s18 + $0x9c0] sm:$0xff] %v642_v31 }
 0x11b   : > { %787 = vxpose.xlu1.b32.cont [9/16] %v292_v32, 128  ;;  %v675_v34 = vpop.trf.xlu1  ;;  %755 = vxpose.xlu0.b32.cont [9/16] %v291_v33, 128  ;;  %v643_v35 = vpop.trf.xlu0  ;;  %v339_v32 = vld [vmem:[%s2147_s4 + $0x540] sm:$0xff]  ;;  %v293_v33 = vld [vmem:[%s2147_s4 + $0x3d0] sm:$0xff] }
 0x11c   : > { %1388 = vst [vmem:[%s2221_s18 + $0x208] sm:$0xff] %v675_v34  ;;  %1643 = vst [vmem:[%s2221_s18 + $0xa00] sm:$0xff] %v643_v35 }
 0x11f   : > { %788 = vxpose.xlu1.b32.cont [10/16] %v295_v36, 128  ;;  %v676_v38 = vpop.trf.xlu1  ;;  %756 = vxpose.xlu0.b32.cont [10/16] %v294_v37, 128  ;;  %v644_v39 = vpop.trf.xlu0  ;;  %v342_v36 = vld [vmem:[%s2147_s4 + $0x558] sm:$0xff]  ;;  %v296_v37 = vld [vmem:[%s2147_s4 + $0x3e8] sm:$0xff] }
 0x120   : > { %1396 = vst [vmem:[%s2221_s18 + $0x248] sm:$0xff] %v676_v38  ;;  %1651 = vst [vmem:[%s2221_s18 + $0xa40] sm:$0xff] %v644_v39 }
 0x123   : > { %789 = vxpose.xlu1.b32.cont [11/16] %v298_v40, 128  ;;  %v677_v42 = vpop.trf.xlu1  ;;  %757 = vxpose.xlu0.b32.cont [11/16] %v297_v41, 128  ;;  %v645_v43 = vpop.trf.xlu0  ;;  %v345_v40 = vld [vmem:[%s2147_s4 + $0x570] sm:$0xff]  ;;  %v299_v41 = vld [vmem:[%s2147_s4 + $0x400] sm:$0xff] }
 0x124   : > { %1404 = vst [vmem:[%s2221_s18 + $0x288] sm:$0xff] %v677_v42  ;;  %1659 = vst [vmem:[%s2221_s18 + $0xa80] sm:$0xff] %v645_v43 }
 0x127   : > { %790 = vxpose.xlu1.b32.cont [12/16] %v301_v44, 128  ;;  %v678_v46 = vpop.trf.xlu1  ;;  %758 = vxpose.xlu0.b32.cont [12/16] %v300_v45, 128  ;;  %v646_v47 = vpop.trf.xlu0  ;;  %v348_v44 = vld [vmem:[%s2147_s4 + $0x588] sm:$0xff]  ;;  %v302_v45 = vld [vmem:[%s2147_s4 + $0x418] sm:$0xff] }
 0x128   : > { %1412 = vst [vmem:[%s2221_s18 + $0x2c8] sm:$0xff] %v678_v46  ;;  %1667 = vst [vmem:[%s2221_s18 + $0xac0] sm:$0xff] %v646_v47 }
 0x12b   : > { %791 = vxpose.xlu1.b32.cont [13/16] %v304_v48, 128  ;;  %v679_v50 = vpop.trf.xlu1  ;;  %759 = vxpose.xlu0.b32.cont [13/16] %v303_v49, 128  ;;  %v647_v51 = vpop.trf.xlu0  ;;  %v351_v48 = vld [vmem:[%s2147_s4 + $0x5a0] sm:$0xff]  ;;  %v305_v49 = vld [vmem:[%s2147_s4 + $0x430] sm:$0xff] }
 0x12c   : > { %1420 = vst [vmem:[%s2221_s18 + $0x308] sm:$0xff] %v679_v50  ;;  %1675 = vst [vmem:[%s2221_s18 + $0xb00] sm:$0xff] %v647_v51 }
 0x12f   : > { %792 = vxpose.xlu1.b32.cont [14/16] %v307_v52, 128  ;;  %v680_v54 = vpop.trf.xlu1  ;;  %760 = vxpose.xlu0.b32.cont [14/16] %v306_v53, 128  ;;  %v648_v55 = vpop.trf.xlu0  ;;  %v354_v52 = vld [vmem:[%s2147_s4 + $0x5b8] sm:$0xff]  ;;  %v308_v53 = vld [vmem:[%s2147_s4 + $0x448] sm:$0xff] }
 0x130   : > { %1428 = vst [vmem:[%s2221_s18 + $0x348] sm:$0xff] %v680_v54  ;;  %1683 = vst [vmem:[%s2221_s18 + $0xb40] sm:$0xff] %v648_v55 }
 0x133   : > { %793 = vxpose.xlu1.b32.cont [15/16] %v310_v56, 128  ;;  %v681_v58 = vpop.trf.xlu1  ;;  %761 = vxpose.xlu0.b32.cont [15/16] %v309_v57, 128  ;;  %v649_v59 = vpop.trf.xlu0  ;;  %v357_v56 = vld [vmem:[%s2147_s4 + $0x5d0] sm:$0xff]  ;;  %v311_v57 = vld [vmem:[%s2147_s4 + $0x460] sm:$0xff] }
 0x134   : > { %1436 = vst [vmem:[%s2221_s18 + $0x388] sm:$0xff] %v681_v58  ;;  %1691 = vst [vmem:[%s2221_s18 + $0xb80] sm:$0xff] %v649_v59 }
 0x137   : > { %794 = vxpose.xlu1.b32.end [16/16] %v313_v60, 128  ;;  %v682_v62 = vpop.trf.xlu1  ;;  %762 = vxpose.xlu0.b32.end [16/16] %v312_v61, 128  ;;  %v650_v63 = vpop.trf.xlu0  ;;  %v360_v60 = vld [vmem:[%s2147_s4 + $0x5e8] sm:$0xff]  ;;  %v314_v61 = vld [vmem:[%s2147_s4 + $0x478] sm:$0xff] }
 0x138   : > { %1444 = vst [vmem:[%s2221_s18 + $0x3c8] sm:$0xff] %v682_v62  ;;  %1699 = vst [vmem:[%s2221_s18 + $0xbc0] sm:$0xff] %v650_v63 }
 0x13b   : > { %843 = vxpose.xlu1.b32.start [1/16] %v315_v0, 128  ;;  %v731_v2 = vpop.trf.xlu1  ;;  %811 = vxpose.xlu0.b32.start [1/16] %v269_v1, 128  ;;  %v699_v3 = vpop.trf.xlu0  ;;  %v317_v0 = vld [vmem:[%s2147_s4 + $0x490] sm:$0xff]  ;;  %v316_v1 = vld [vmem:[%s2147_s4 + $0x488] sm:$0xff] }
 0x13c   : > { %1580 = vst [vmem:[%s2221_s18 + $0x808] sm:$0xff] %v731_v2  ;;  %1452 = vst [vmem:[%s2221_s18 + $0x408] sm:$0xff] %v699_v3 }
 0x13f   : > { %844 = vxpose.xlu1.b32.cont [2/16] %v318_v4, 128  ;;  %v732_v6 = vpop.trf.xlu1  ;;  %812 = vxpose.xlu0.b32.cont [2/16] %v272_v5, 128  ;;  %v700_v7 = vpop.trf.xlu0  ;;  %v320_v4 = vld [vmem:[%s2147_s4 + $0x4a8] sm:$0xff]  ;;  %v319_v5 = vld [vmem:[%s2147_s4 + $0x4a0] sm:$0xff] }
 0x140   : > { %1588 = vst [vmem:[%s2221_s18 + $0x848] sm:$0xff] %v732_v6  ;;  %1460 = vst [vmem:[%s2221_s18 + $0x448] sm:$0xff] %v700_v7 }
 0x143   : > { %845 = vxpose.xlu1.b32.cont [3/16] %v321_v8, 128  ;;  %v733_v10 = vpop.trf.xlu1  ;;  %813 = vxpose.xlu0.b32.cont [3/16] %v275_v9, 128  ;;  %v701_v11 = vpop.trf.xlu0  ;;  %v323_v8 = vld [vmem:[%s2147_s4 + $0x4c0] sm:$0xff]  ;;  %v322_v9 = vld [vmem:[%s2147_s4 + $0x4b8] sm:$0xff] }
 0x144   : > { %1596 = vst [vmem:[%s2221_s18 + $0x888] sm:$0xff] %v733_v10  ;;  %1468 = vst [vmem:[%s2221_s18 + $0x488] sm:$0xff] %v701_v11 }
 0x147   : > { %846 = vxpose.xlu1.b32.cont [4/16] %v324_v12, 128  ;;  %v734_v14 = vpop.trf.xlu1  ;;  %814 = vxpose.xlu0.b32.cont [4/16] %v278_v13, 128  ;;  %v702_v15 = vpop.trf.xlu0  ;;  %v326_v12 = vld [vmem:[%s2147_s4 + $0x4d8] sm:$0xff]  ;;  %v325_v13 = vld [vmem:[%s2147_s4 + $0x4d0] sm:$0xff] }
 0x148   : > { %1604 = vst [vmem:[%s2221_s18 + $0x8c8] sm:$0xff] %v734_v14  ;;  %1476 = vst [vmem:[%s2221_s18 + $0x4c8] sm:$0xff] %v702_v15 }
 0x14b   : > { %847 = vxpose.xlu1.b32.cont [5/16] %v327_v16, 128  ;;  %v735_v18 = vpop.trf.xlu1  ;;  %815 = vxpose.xlu0.b32.cont [5/16] %v281_v17, 128  ;;  %v703_v19 = vpop.trf.xlu0  ;;  %v329_v16 = vld [vmem:[%s2147_s4 + $0x4f0] sm:$0xff]  ;;  %v328_v17 = vld [vmem:[%s2147_s4 + $0x4e8] sm:$0xff] }
 0x14c   : > { %1612 = vst [vmem:[%s2221_s18 + $0x908] sm:$0xff] %v735_v18  ;;  %1484 = vst [vmem:[%s2221_s18 + $0x508] sm:$0xff] %v703_v19 }
 0x14f   : > { %848 = vxpose.xlu1.b32.cont [6/16] %v330_v20, 128  ;;  %v736_v22 = vpop.trf.xlu1  ;;  %816 = vxpose.xlu0.b32.cont [6/16] %v284_v21, 128  ;;  %v704_v23 = vpop.trf.xlu0  ;;  %v332_v20 = vld [vmem:[%s2147_s4 + $0x508] sm:$0xff]  ;;  %v331_v21 = vld [vmem:[%s2147_s4 + $0x500] sm:$0xff] }
 0x150   : > { %1620 = vst [vmem:[%s2221_s18 + $0x948] sm:$0xff] %v736_v22  ;;  %1492 = vst [vmem:[%s2221_s18 + $0x548] sm:$0xff] %v704_v23 }
 0x153   : > { %849 = vxpose.xlu1.b32.cont [7/16] %v333_v24, 128  ;;  %v737_v26 = vpop.trf.xlu1  ;;  %817 = vxpose.xlu0.b32.cont [7/16] %v287_v25, 128  ;;  %v705_v27 = vpop.trf.xlu0  ;;  %v335_v24 = vld [vmem:[%s2147_s4 + $0x520] sm:$0xff]  ;;  %v334_v25 = vld [vmem:[%s2147_s4 + $0x518] sm:$0xff] }
 0x154   : > { %1628 = vst [vmem:[%s2221_s18 + $0x988] sm:$0xff] %v737_v26  ;;  %1500 = vst [vmem:[%s2221_s18 + $0x588] sm:$0xff] %v705_v27 }
 0x157   : > { %850 = vxpose.xlu1.b32.cont [8/16] %v336_v28, 128  ;;  %v738_v30 = vpop.trf.xlu1  ;;  %818 = vxpose.xlu0.b32.cont [8/16] %v290_v29, 128  ;;  %v706_v31 = vpop.trf.xlu0  ;;  %v338_v28 = vld [vmem:[%s2147_s4 + $0x538] sm:$0xff]  ;;  %v337_v29 = vld [vmem:[%s2147_s4 + $0x530] sm:$0xff] }
 0x158   : > { %1636 = vst [vmem:[%s2221_s18 + $0x9c8] sm:$0xff] %v738_v30  ;;  %1508 = vst [vmem:[%s2221_s18 + $0x5c8] sm:$0xff] %v706_v31 }
 0x15b   : > { %851 = vxpose.xlu1.b32.cont [9/16] %v339_v32, 128  ;;  %v739_v34 = vpop.trf.xlu1  ;;  %819 = vxpose.xlu0.b32.cont [9/16] %v293_v33, 128  ;;  %v707_v35 = vpop.trf.xlu0  ;;  %v341_v32 = vld [vmem:[%s2147_s4 + $0x550] sm:$0xff]  ;;  %v340_v33 = vld [vmem:[%s2147_s4 + $0x548] sm:$0xff] }
 0x15c   : > { %1644 = vst [vmem:[%s2221_s18 + $0xa08] sm:$0xff] %v739_v34  ;;  %1516 = vst [vmem:[%s2221_s18 + $0x608] sm:$0xff] %v707_v35 }
 0x15f   : > { %852 = vxpose.xlu1.b32.cont [10/16] %v342_v36, 128  ;;  %v740_v38 = vpop.trf.xlu1  ;;  %820 = vxpose.xlu0.b32.cont [10/16] %v296_v37, 128  ;;  %v708_v39 = vpop.trf.xlu0  ;;  %v344_v36 = vld [vmem:[%s2147_s4 + $0x568] sm:$0xff]  ;;  %v343_v37 = vld [vmem:[%s2147_s4 + $0x560] sm:$0xff] }
 0x160   : > { %1652 = vst [vmem:[%s2221_s18 + $0xa48] sm:$0xff] %v740_v38  ;;  %1524 = vst [vmem:[%s2221_s18 + $0x648] sm:$0xff] %v708_v39 }
 0x163   : > { %853 = vxpose.xlu1.b32.cont [11/16] %v345_v40, 128  ;;  %v741_v42 = vpop.trf.xlu1  ;;  %821 = vxpose.xlu0.b32.cont [11/16] %v299_v41, 128  ;;  %v709_v43 = vpop.trf.xlu0  ;;  %v347_v40 = vld [vmem:[%s2147_s4 + $0x580] sm:$0xff]  ;;  %v346_v41 = vld [vmem:[%s2147_s4 + $0x578] sm:$0xff] }
 0x164   : > { %1660 = vst [vmem:[%s2221_s18 + $0xa88] sm:$0xff] %v741_v42  ;;  %1532 = vst [vmem:[%s2221_s18 + $0x688] sm:$0xff] %v709_v43 }
 0x167   : > { %854 = vxpose.xlu1.b32.cont [12/16] %v348_v44, 128  ;;  %v742_v46 = vpop.trf.xlu1  ;;  %822 = vxpose.xlu0.b32.cont [12/16] %v302_v45, 128  ;;  %v710_v47 = vpop.trf.xlu0  ;;  %v350_v44 = vld [vmem:[%s2147_s4 + $0x598] sm:$0xff]  ;;  %v349_v45 = vld [vmem:[%s2147_s4 + $0x590] sm:$0xff] }
 0x168   : > { %1668 = vst [vmem:[%s2221_s18 + $0xac8] sm:$0xff] %v742_v46  ;;  %1540 = vst [vmem:[%s2221_s18 + $0x6c8] sm:$0xff] %v710_v47 }
 0x16b   : > { %855 = vxpose.xlu1.b32.cont [13/16] %v351_v48, 128  ;;  %v743_v50 = vpop.trf.xlu1  ;;  %823 = vxpose.xlu0.b32.cont [13/16] %v305_v49, 128  ;;  %v711_v51 = vpop.trf.xlu0  ;;  %v353_v48 = vld [vmem:[%s2147_s4 + $0x5b0] sm:$0xff]  ;;  %v352_v49 = vld [vmem:[%s2147_s4 + $0x5a8] sm:$0xff] }
 0x16c   : > { %1676 = vst [vmem:[%s2221_s18 + $0xb08] sm:$0xff] %v743_v50  ;;  %1548 = vst [vmem:[%s2221_s18 + $0x708] sm:$0xff] %v711_v51 }
 0x16f   : > { %856 = vxpose.xlu1.b32.cont [14/16] %v354_v52, 128  ;;  %v744_v54 = vpop.trf.xlu1  ;;  %824 = vxpose.xlu0.b32.cont [14/16] %v308_v53, 128  ;;  %v712_v55 = vpop.trf.xlu0  ;;  %v356_v52 = vld [vmem:[%s2147_s4 + $0x5c8] sm:$0xff]  ;;  %v355_v53 = vld [vmem:[%s2147_s4 + $0x5c0] sm:$0xff] }
 0x170   : > { %1684 = vst [vmem:[%s2221_s18 + $0xb48] sm:$0xff] %v744_v54  ;;  %1556 = vst [vmem:[%s2221_s18 + $0x748] sm:$0xff] %v712_v55 }
 0x173   : > { %857 = vxpose.xlu1.b32.cont [15/16] %v357_v56, 128  ;;  %v745_v58 = vpop.trf.xlu1  ;;  %825 = vxpose.xlu0.b32.cont [15/16] %v311_v57, 128  ;;  %v713_v59 = vpop.trf.xlu0  ;;  %v359_v56 = vld [vmem:[%s2147_s4 + $0x5e0] sm:$0xff]  ;;  %v358_v57 = vld [vmem:[%s2147_s4 + $0x5d8] sm:$0xff] }
 0x174   : > { %1692 = vst [vmem:[%s2221_s18 + $0xb88] sm:$0xff] %v745_v58  ;;  %1564 = vst [vmem:[%s2221_s18 + $0x788] sm:$0xff] %v713_v59 }
 0x177   : > { %858 = vxpose.xlu1.b32.end [16/16] %v360_v60, 128  ;;  %v746_v62 = vpop.trf.xlu1  ;;  %826 = vxpose.xlu0.b32.end [16/16] %v314_v61, 128  ;;  %v714_v63 = vpop.trf.xlu0  ;;  %v362_v60 = vld [vmem:[%s2147_s4 + $0x5f8] sm:$0xff]  ;;  %v361_v61 = vld [vmem:[%s2147_s4 + $0x5f0] sm:$0xff] }
 0x178   : > { %1700 = vst [vmem:[%s2221_s18 + $0xbc8] sm:$0xff] %v746_v62  ;;  %1572 = vst [vmem:[%s2221_s18 + $0x7c8] sm:$0xff] %v714_v63 }
 0x17b   : > { %907 = vxpose.xlu1.b32.start [1/16] %v317_v0, 128  ;;  %v795_v2 = vpop.trf.xlu1  ;;  %875 = vxpose.xlu0.b32.start [1/16] %v316_v1, 128  ;;  %v763_v3 = vpop.trf.xlu0  ;;  %v364_v0 = vld [vmem:[%s2147_s4 + $0x608] sm:$0xff]  ;;  %v363_v1 = vld [vmem:[%s2147_s4 + $0x600] sm:$0xff] }
 0x17c   : > { %1453 = vst [vmem:[%s2221_s18 + $0x410] sm:$0xff] %v795_v2  ;;  %1325 = vst [vmem:[%s2221_s18 + $0x10] sm:$0xff] %v763_v3 }
 0x17f   : > { %908 = vxpose.xlu1.b32.cont [2/16] %v320_v4, 128  ;;  %v796_v6 = vpop.trf.xlu1  ;;  %876 = vxpose.xlu0.b32.cont [2/16] %v319_v5, 128  ;;  %v764_v7 = vpop.trf.xlu0  ;;  %v367_v4 = vld [vmem:[%s2147_s4 + $0x620] sm:$0xff]  ;;  %v366_v5 = vld [vmem:[%s2147_s4 + $0x618] sm:$0xff] }
 0x180   : > { %1461 = vst [vmem:[%s2221_s18 + $0x450] sm:$0xff] %v796_v6  ;;  %1333 = vst [vmem:[%s2221_s18 + $0x50] sm:$0xff] %v764_v7 }
 0x183   : > { %909 = vxpose.xlu1.b32.cont [3/16] %v323_v8, 128  ;;  %v797_v10 = vpop.trf.xlu1  ;;  %877 = vxpose.xlu0.b32.cont [3/16] %v322_v9, 128  ;;  %v765_v11 = vpop.trf.xlu0  ;;  %v370_v8 = vld [vmem:[%s2147_s4 + $0x638] sm:$0xff]  ;;  %v369_v9 = vld [vmem:[%s2147_s4 + $0x630] sm:$0xff] }
 0x184   : > { %1469 = vst [vmem:[%s2221_s18 + $0x490] sm:$0xff] %v797_v10  ;;  %1341 = vst [vmem:[%s2221_s18 + $0x90] sm:$0xff] %v765_v11 }
 0x187   : > { %910 = vxpose.xlu1.b32.cont [4/16] %v326_v12, 128  ;;  %v798_v14 = vpop.trf.xlu1  ;;  %878 = vxpose.xlu0.b32.cont [4/16] %v325_v13, 128  ;;  %v766_v15 = vpop.trf.xlu0  ;;  %v373_v12 = vld [vmem:[%s2147_s4 + $0x650] sm:$0xff]  ;;  %v372_v13 = vld [vmem:[%s2147_s4 + $0x648] sm:$0xff] }
 0x188   : > { %1477 = vst [vmem:[%s2221_s18 + $0x4d0] sm:$0xff] %v798_v14  ;;  %1349 = vst [vmem:[%s2221_s18 + $0xd0] sm:$0xff] %v766_v15 }
 0x18b   : > { %911 = vxpose.xlu1.b32.cont [5/16] %v329_v16, 128  ;;  %v799_v18 = vpop.trf.xlu1  ;;  %879 = vxpose.xlu0.b32.cont [5/16] %v328_v17, 128  ;;  %v767_v19 = vpop.trf.xlu0  ;;  %v376_v16 = vld [vmem:[%s2147_s4 + $0x668] sm:$0xff]  ;;  %v375_v17 = vld [vmem:[%s2147_s4 + $0x660] sm:$0xff] }
 0x18c   : > { %1485 = vst [vmem:[%s2221_s18 + $0x510] sm:$0xff] %v799_v18  ;;  %1357 = vst [vmem:[%s2221_s18 + $0x110] sm:$0xff] %v767_v19 }
 0x18f   : > { %912 = vxpose.xlu1.b32.cont [6/16] %v332_v20, 128  ;;  %v800_v22 = vpop.trf.xlu1  ;;  %880 = vxpose.xlu0.b32.cont [6/16] %v331_v21, 128  ;;  %v768_v23 = vpop.trf.xlu0  ;;  %v379_v20 = vld [vmem:[%s2147_s4 + $0x680] sm:$0xff]  ;;  %v378_v21 = vld [vmem:[%s2147_s4 + $0x678] sm:$0xff] }
 0x190   : > { %1493 = vst [vmem:[%s2221_s18 + $0x550] sm:$0xff] %v800_v22  ;;  %1365 = vst [vmem:[%s2221_s18 + $0x150] sm:$0xff] %v768_v23 }
 0x193   : > { %913 = vxpose.xlu1.b32.cont [7/16] %v335_v24, 128  ;;  %v801_v26 = vpop.trf.xlu1  ;;  %881 = vxpose.xlu0.b32.cont [7/16] %v334_v25, 128  ;;  %v769_v27 = vpop.trf.xlu0  ;;  %v382_v24 = vld [vmem:[%s2147_s4 + $0x698] sm:$0xff]  ;;  %v381_v25 = vld [vmem:[%s2147_s4 + $0x690] sm:$0xff] }
 0x194   : > { %1501 = vst [vmem:[%s2221_s18 + $0x590] sm:$0xff] %v801_v26  ;;  %1373 = vst [vmem:[%s2221_s18 + $0x190] sm:$0xff] %v769_v27 }
 0x197   : > { %914 = vxpose.xlu1.b32.cont [8/16] %v338_v28, 128  ;;  %v802_v30 = vpop.trf.xlu1  ;;  %882 = vxpose.xlu0.b32.cont [8/16] %v337_v29, 128  ;;  %v770_v31 = vpop.trf.xlu0  ;;  %v385_v28 = vld [vmem:[%s2147_s4 + $0x6b0] sm:$0xff]  ;;  %v384_v29 = vld [vmem:[%s2147_s4 + $0x6a8] sm:$0xff] }
 0x198   : > { %1509 = vst [vmem:[%s2221_s18 + $0x5d0] sm:$0xff] %v802_v30  ;;  %1381 = vst [vmem:[%s2221_s18 + $0x1d0] sm:$0xff] %v770_v31 }
 0x19b   : > { %915 = vxpose.xlu1.b32.cont [9/16] %v341_v32, 128  ;;  %v803_v34 = vpop.trf.xlu1  ;;  %883 = vxpose.xlu0.b32.cont [9/16] %v340_v33, 128  ;;  %v771_v35 = vpop.trf.xlu0  ;;  %v388_v32 = vld [vmem:[%s2147_s4 + $0x6c8] sm:$0xff]  ;;  %v387_v33 = vld [vmem:[%s2147_s4 + $0x6c0] sm:$0xff] }
 0x19c   : > { %1517 = vst [vmem:[%s2221_s18 + $0x610] sm:$0xff] %v803_v34  ;;  %1389 = vst [vmem:[%s2221_s18 + $0x210] sm:$0xff] %v771_v35 }
 0x19f   : > { %916 = vxpose.xlu1.b32.cont [10/16] %v344_v36, 128  ;;  %v804_v38 = vpop.trf.xlu1  ;;  %884 = vxpose.xlu0.b32.cont [10/16] %v343_v37, 128  ;;  %v772_v39 = vpop.trf.xlu0  ;;  %v391_v36 = vld [vmem:[%s2147_s4 + $0x6e0] sm:$0xff]  ;;  %v390_v37 = vld [vmem:[%s2147_s4 + $0x6d8] sm:$0xff] }
 0x1a0   : > { %1525 = vst [vmem:[%s2221_s18 + $0x650] sm:$0xff] %v804_v38  ;;  %1397 = vst [vmem:[%s2221_s18 + $0x250] sm:$0xff] %v772_v39 }
 0x1a3   : > { %917 = vxpose.xlu1.b32.cont [11/16] %v347_v40, 128  ;;  %v805_v42 = vpop.trf.xlu1  ;;  %885 = vxpose.xlu0.b32.cont [11/16] %v346_v41, 128  ;;  %v773_v43 = vpop.trf.xlu0  ;;  %v394_v40 = vld [vmem:[%s2147_s4 + $0x6f8] sm:$0xff]  ;;  %v393_v41 = vld [vmem:[%s2147_s4 + $0x6f0] sm:$0xff] }
 0x1a4   : > { %1533 = vst [vmem:[%s2221_s18 + $0x690] sm:$0xff] %v805_v42  ;;  %1405 = vst [vmem:[%s2221_s18 + $0x290] sm:$0xff] %v773_v43 }
 0x1a7   : > { %918 = vxpose.xlu1.b32.cont [12/16] %v350_v44, 128  ;;  %v806_v46 = vpop.trf.xlu1  ;;  %886 = vxpose.xlu0.b32.cont [12/16] %v349_v45, 128  ;;  %v774_v47 = vpop.trf.xlu0  ;;  %v397_v44 = vld [vmem:[%s2147_s4 + $0x710] sm:$0xff]  ;;  %v396_v45 = vld [vmem:[%s2147_s4 + $0x708] sm:$0xff] }
 0x1a8   : > { %1541 = vst [vmem:[%s2221_s18 + $0x6d0] sm:$0xff] %v806_v46  ;;  %1413 = vst [vmem:[%s2221_s18 + $0x2d0] sm:$0xff] %v774_v47 }
 0x1ab   : > { %919 = vxpose.xlu1.b32.cont [13/16] %v353_v48, 128  ;;  %v807_v50 = vpop.trf.xlu1  ;;  %887 = vxpose.xlu0.b32.cont [13/16] %v352_v49, 128  ;;  %v775_v51 = vpop.trf.xlu0  ;;  %v400_v48 = vld [vmem:[%s2147_s4 + $0x728] sm:$0xff]  ;;  %v399_v49 = vld [vmem:[%s2147_s4 + $0x720] sm:$0xff] }
 0x1ac   : > { %1549 = vst [vmem:[%s2221_s18 + $0x710] sm:$0xff] %v807_v50  ;;  %1421 = vst [vmem:[%s2221_s18 + $0x310] sm:$0xff] %v775_v51 }
 0x1af   : > { %920 = vxpose.xlu1.b32.cont [14/16] %v356_v52, 128  ;;  %v808_v54 = vpop.trf.xlu1  ;;  %888 = vxpose.xlu0.b32.cont [14/16] %v355_v53, 128  ;;  %v776_v55 = vpop.trf.xlu0  ;;  %v403_v52 = vld [vmem:[%s2147_s4 + $0x740] sm:$0xff]  ;;  %v402_v53 = vld [vmem:[%s2147_s4 + $0x738] sm:$0xff] }
 0x1b0   : > { %1557 = vst [vmem:[%s2221_s18 + $0x750] sm:$0xff] %v808_v54  ;;  %1429 = vst [vmem:[%s2221_s18 + $0x350] sm:$0xff] %v776_v55 }
 0x1b3   : > { %921 = vxpose.xlu1.b32.cont [15/16] %v359_v56, 128  ;;  %v809_v58 = vpop.trf.xlu1  ;;  %889 = vxpose.xlu0.b32.cont [15/16] %v358_v57, 128  ;;  %v777_v59 = vpop.trf.xlu0  ;;  %v406_v56 = vld [vmem:[%s2147_s4 + $0x758] sm:$0xff]  ;;  %v405_v57 = vld [vmem:[%s2147_s4 + $0x750] sm:$0xff] }
 0x1b4   : > { %1565 = vst [vmem:[%s2221_s18 + $0x790] sm:$0xff] %v809_v58  ;;  %1437 = vst [vmem:[%s2221_s18 + $0x390] sm:$0xff] %v777_v59 }
 0x1b7   : > { %922 = vxpose.xlu1.b32.end [16/16] %v362_v60, 128  ;;  %v810_v62 = vpop.trf.xlu1  ;;  %890 = vxpose.xlu0.b32.end [16/16] %v361_v61, 128  ;;  %v778_v63 = vpop.trf.xlu0  ;;  %v409_v60 = vld [vmem:[%s2147_s4 + $0x770] sm:$0xff]  ;;  %v408_v61 = vld [vmem:[%s2147_s4 + $0x768] sm:$0xff] }
 0x1b8   : > { %1573 = vst [vmem:[%s2221_s18 + $0x7d0] sm:$0xff] %v810_v62  ;;  %1445 = vst [vmem:[%s2221_s18 + $0x3d0] sm:$0xff] %v778_v63 }
 0x1bb   : > { %971 = vxpose.xlu1.b32.start [1/16] %v364_v0, 128  ;;  %v859_v2 = vpop.trf.xlu1  ;;  %939 = vxpose.xlu0.b32.start [1/16] %v363_v1, 128  ;;  %v827_v3 = vpop.trf.xlu0  ;;  %v411_v0 = vld [vmem:[%s2147_s4 + $0x780] sm:$0xff]  ;;  %v365_v1 = vld [vmem:[%s2147_s4 + $0x610] sm:$0xff] }
 0x1bc   : > { %1326 = vst [vmem:[%s2221_s18 + $0x18] sm:$0xff] %v859_v2  ;;  %1581 = vst [vmem:[%s2221_s18 + $0x810] sm:$0xff] %v827_v3 }
 0x1bf   : > { %972 = vxpose.xlu1.b32.cont [2/16] %v367_v4, 128  ;;  %v860_v6 = vpop.trf.xlu1  ;;  %940 = vxpose.xlu0.b32.cont [2/16] %v366_v5, 128  ;;  %v828_v7 = vpop.trf.xlu0  ;;  %v414_v4 = vld [vmem:[%s2147_s4 + $0x798] sm:$0xff]  ;;  %v368_v5 = vld [vmem:[%s2147_s4 + $0x628] sm:$0xff] }
 0x1c0   : > { %1334 = vst [vmem:[%s2221_s18 + $0x58] sm:$0xff] %v860_v6  ;;  %1589 = vst [vmem:[%s2221_s18 + $0x850] sm:$0xff] %v828_v7 }
 0x1c3   : > { %973 = vxpose.xlu1.b32.cont [3/16] %v370_v8, 128  ;;  %v861_v10 = vpop.trf.xlu1  ;;  %941 = vxpose.xlu0.b32.cont [3/16] %v369_v9, 128  ;;  %v829_v11 = vpop.trf.xlu0  ;;  %v417_v8 = vld [vmem:[%s2147_s4 + $0x7b0] sm:$0xff]  ;;  %v371_v9 = vld [vmem:[%s2147_s4 + $0x640] sm:$0xff] }
 0x1c4   : > { %1342 = vst [vmem:[%s2221_s18 + $0x98] sm:$0xff] %v861_v10  ;;  %1597 = vst [vmem:[%s2221_s18 + $0x890] sm:$0xff] %v829_v11 }
 0x1c7   : > { %974 = vxpose.xlu1.b32.cont [4/16] %v373_v12, 128  ;;  %v862_v14 = vpop.trf.xlu1  ;;  %942 = vxpose.xlu0.b32.cont [4/16] %v372_v13, 128  ;;  %v830_v15 = vpop.trf.xlu0  ;;  %v420_v12 = vld [vmem:[%s2147_s4 + $0x7c8] sm:$0xff]  ;;  %v374_v13 = vld [vmem:[%s2147_s4 + $0x658] sm:$0xff] }
 0x1c8   : > { %1350 = vst [vmem:[%s2221_s18 + $0xd8] sm:$0xff] %v862_v14  ;;  %1605 = vst [vmem:[%s2221_s18 + $0x8d0] sm:$0xff] %v830_v15 }
 0x1cb   : > { %975 = vxpose.xlu1.b32.cont [5/16] %v376_v16, 128  ;;  %v863_v18 = vpop.trf.xlu1  ;;  %943 = vxpose.xlu0.b32.cont [5/16] %v375_v17, 128  ;;  %v831_v19 = vpop.trf.xlu0  ;;  %v423_v16 = vld [vmem:[%s2147_s4 + $0x7e0] sm:$0xff]  ;;  %v377_v17 = vld [vmem:[%s2147_s4 + $0x670] sm:$0xff] }
 0x1cc   : > { %1358 = vst [vmem:[%s2221_s18 + $0x118] sm:$0xff] %v863_v18  ;;  %1613 = vst [vmem:[%s2221_s18 + $0x910] sm:$0xff] %v831_v19 }
 0x1cf   : > { %976 = vxpose.xlu1.b32.cont [6/16] %v379_v20, 128  ;;  %v864_v22 = vpop.trf.xlu1  ;;  %944 = vxpose.xlu0.b32.cont [6/16] %v378_v21, 128  ;;  %v832_v23 = vpop.trf.xlu0  ;;  %v426_v20 = vld [vmem:[%s2147_s4 + $0x7f8] sm:$0xff]  ;;  %v380_v21 = vld [vmem:[%s2147_s4 + $0x688] sm:$0xff] }
 0x1d0   : > { %1366 = vst [vmem:[%s2221_s18 + $0x158] sm:$0xff] %v864_v22  ;;  %1621 = vst [vmem:[%s2221_s18 + $0x950] sm:$0xff] %v832_v23 }
 0x1d3   : > { %977 = vxpose.xlu1.b32.cont [7/16] %v382_v24, 128  ;;  %v865_v26 = vpop.trf.xlu1  ;;  %945 = vxpose.xlu0.b32.cont [7/16] %v381_v25, 128  ;;  %v833_v27 = vpop.trf.xlu0  ;;  %v429_v24 = vld [vmem:[%s2147_s4 + $0x810] sm:$0xff]  ;;  %v383_v25 = vld [vmem:[%s2147_s4 + $0x6a0] sm:$0xff] }
 0x1d4   : > { %1374 = vst [vmem:[%s2221_s18 + $0x198] sm:$0xff] %v865_v26  ;;  %1629 = vst [vmem:[%s2221_s18 + $0x990] sm:$0xff] %v833_v27 }
 0x1d7   : > { %978 = vxpose.xlu1.b32.cont [8/16] %v385_v28, 128  ;;  %v866_v30 = vpop.trf.xlu1  ;;  %946 = vxpose.xlu0.b32.cont [8/16] %v384_v29, 128  ;;  %v834_v31 = vpop.trf.xlu0  ;;  %v432_v28 = vld [vmem:[%s2147_s4 + $0x828] sm:$0xff]  ;;  %v386_v29 = vld [vmem:[%s2147_s4 + $0x6b8] sm:$0xff] }
 0x1d8   : > { %1382 = vst [vmem:[%s2221_s18 + $0x1d8] sm:$0xff] %v866_v30  ;;  %1637 = vst [vmem:[%s2221_s18 + $0x9d0] sm:$0xff] %v834_v31 }
 0x1db   : > { %979 = vxpose.xlu1.b32.cont [9/16] %v388_v32, 128  ;;  %v867_v34 = vpop.trf.xlu1  ;;  %947 = vxpose.xlu0.b32.cont [9/16] %v387_v33, 128  ;;  %v835_v35 = vpop.trf.xlu0  ;;  %v435_v32 = vld [vmem:[%s2147_s4 + $0x840] sm:$0xff]  ;;  %v389_v33 = vld [vmem:[%s2147_s4 + $0x6d0] sm:$0xff] }
 0x1dc   : > { %1390 = vst [vmem:[%s2221_s18 + $0x218] sm:$0xff] %v867_v34  ;;  %1645 = vst [vmem:[%s2221_s18 + $0xa10] sm:$0xff] %v835_v35 }
 0x1df   : > { %980 = vxpose.xlu1.b32.cont [10/16] %v391_v36, 128  ;;  %v868_v38 = vpop.trf.xlu1  ;;  %948 = vxpose.xlu0.b32.cont [10/16] %v390_v37, 128  ;;  %v836_v39 = vpop.trf.xlu0  ;;  %v438_v36 = vld [vmem:[%s2147_s4 + $0x858] sm:$0xff]  ;;  %v392_v37 = vld [vmem:[%s2147_s4 + $0x6e8] sm:$0xff] }
 0x1e0   : > { %1398 = vst [vmem:[%s2221_s18 + $0x258] sm:$0xff] %v868_v38  ;;  %1653 = vst [vmem:[%s2221_s18 + $0xa50] sm:$0xff] %v836_v39 }
 0x1e3   : > { %981 = vxpose.xlu1.b32.cont [11/16] %v394_v40, 128  ;;  %v869_v42 = vpop.trf.xlu1  ;;  %949 = vxpose.xlu0.b32.cont [11/16] %v393_v41, 128  ;;  %v837_v43 = vpop.trf.xlu0  ;;  %v441_v40 = vld [vmem:[%s2147_s4 + $0x870] sm:$0xff]  ;;  %v395_v41 = vld [vmem:[%s2147_s4 + $0x700] sm:$0xff] }
 0x1e4   : > { %1406 = vst [vmem:[%s2221_s18 + $0x298] sm:$0xff] %v869_v42  ;;  %1661 = vst [vmem:[%s2221_s18 + $0xa90] sm:$0xff] %v837_v43 }
 0x1e7   : > { %982 = vxpose.xlu1.b32.cont [12/16] %v397_v44, 128  ;;  %v870_v46 = vpop.trf.xlu1  ;;  %950 = vxpose.xlu0.b32.cont [12/16] %v396_v45, 128  ;;  %v838_v47 = vpop.trf.xlu0  ;;  %v444_v44 = vld [vmem:[%s2147_s4 + $0x888] sm:$0xff]  ;;  %v398_v45 = vld [vmem:[%s2147_s4 + $0x718] sm:$0xff] }
 0x1e8   : > { %1414 = vst [vmem:[%s2221_s18 + $0x2d8] sm:$0xff] %v870_v46  ;;  %1669 = vst [vmem:[%s2221_s18 + $0xad0] sm:$0xff] %v838_v47 }
 0x1eb   : > { %983 = vxpose.xlu1.b32.cont [13/16] %v400_v48, 128  ;;  %v871_v50 = vpop.trf.xlu1  ;;  %951 = vxpose.xlu0.b32.cont [13/16] %v399_v49, 128  ;;  %v839_v51 = vpop.trf.xlu0  ;;  %v447_v48 = vld [vmem:[%s2147_s4 + $0x8a0] sm:$0xff]  ;;  %v401_v49 = vld [vmem:[%s2147_s4 + $0x730] sm:$0xff] }
 0x1ec   : > { %1422 = vst [vmem:[%s2221_s18 + $0x318] sm:$0xff] %v871_v50  ;;  %1677 = vst [vmem:[%s2221_s18 + $0xb10] sm:$0xff] %v839_v51 }
 0x1ef   : > { %984 = vxpose.xlu1.b32.cont [14/16] %v403_v52, 128  ;;  %v872_v54 = vpop.trf.xlu1  ;;  %952 = vxpose.xlu0.b32.cont [14/16] %v402_v53, 128  ;;  %v840_v55 = vpop.trf.xlu0  ;;  %v450_v52 = vld [vmem:[%s2147_s4 + $0x8b8] sm:$0xff]  ;;  %v404_v53 = vld [vmem:[%s2147_s4 + $0x748] sm:$0xff] }
 0x1f0   : > { %1430 = vst [vmem:[%s2221_s18 + $0x358] sm:$0xff] %v872_v54  ;;  %1685 = vst [vmem:[%s2221_s18 + $0xb50] sm:$0xff] %v840_v55 }
 0x1f3   : > { %985 = vxpose.xlu1.b32.cont [15/16] %v406_v56, 128  ;;  %v873_v58 = vpop.trf.xlu1  ;;  %953 = vxpose.xlu0.b32.cont [15/16] %v405_v57, 128  ;;  %v841_v59 = vpop.trf.xlu0  ;;  %v453_v56 = vld [vmem:[%s2147_s4 + $0x8d0] sm:$0xff]  ;;  %v407_v57 = vld [vmem:[%s2147_s4 + $0x760] sm:$0xff] }
 0x1f4   : > { %1438 = vst [vmem:[%s2221_s18 + $0x398] sm:$0xff] %v873_v58  ;;  %1693 = vst [vmem:[%s2221_s18 + $0xb90] sm:$0xff] %v841_v59 }
 0x1f7   : > { %986 = vxpose.xlu1.b32.end [16/16] %v409_v60, 128  ;;  %v874_v62 = vpop.trf.xlu1  ;;  %954 = vxpose.xlu0.b32.end [16/16] %v408_v61, 128  ;;  %v842_v63 = vpop.trf.xlu0  ;;  %v456_v60 = vld [vmem:[%s2147_s4 + $0x8e8] sm:$0xff]  ;;  %v410_v61 = vld [vmem:[%s2147_s4 + $0x778] sm:$0xff] }
 0x1f8   : > { %1446 = vst [vmem:[%s2221_s18 + $0x3d8] sm:$0xff] %v874_v62  ;;  %1701 = vst [vmem:[%s2221_s18 + $0xbd0] sm:$0xff] %v842_v63 }
 0x1fb   : > { %1035 = vxpose.xlu1.b32.start [1/16] %v411_v0, 128  ;;  %v923_v2 = vpop.trf.xlu1  ;;  %1003 = vxpose.xlu0.b32.start [1/16] %v365_v1, 128  ;;  %v891_v3 = vpop.trf.xlu0  ;;  %v413_v0 = vld [vmem:[%s2147_s4 + $0x790] sm:$0xff]  ;;  %v412_v1 = vld [vmem:[%s2147_s4 + $0x788] sm:$0xff] }
 0x1fc   : > { %1582 = vst [vmem:[%s2221_s18 + $0x818] sm:$0xff] %v923_v2  ;;  %1454 = vst [vmem:[%s2221_s18 + $0x418] sm:$0xff] %v891_v3 }
 0x1ff   : > { %1036 = vxpose.xlu1.b32.cont [2/16] %v414_v4, 128  ;;  %v924_v6 = vpop.trf.xlu1  ;;  %1004 = vxpose.xlu0.b32.cont [2/16] %v368_v5, 128  ;;  %v892_v7 = vpop.trf.xlu0  ;;  %v416_v4 = vld [vmem:[%s2147_s4 + $0x7a8] sm:$0xff]  ;;  %v415_v5 = vld [vmem:[%s2147_s4 + $0x7a0] sm:$0xff] }
 0x200   : > { %1590 = vst [vmem:[%s2221_s18 + $0x858] sm:$0xff] %v924_v6  ;;  %1462 = vst [vmem:[%s2221_s18 + $0x458] sm:$0xff] %v892_v7 }
 0x203   : > { %1037 = vxpose.xlu1.b32.cont [3/16] %v417_v8, 128  ;;  %v925_v10 = vpop.trf.xlu1  ;;  %1005 = vxpose.xlu0.b32.cont [3/16] %v371_v9, 128  ;;  %v893_v11 = vpop.trf.xlu0  ;;  %v419_v8 = vld [vmem:[%s2147_s4 + $0x7c0] sm:$0xff]  ;;  %v418_v9 = vld [vmem:[%s2147_s4 + $0x7b8] sm:$0xff] }
 0x204   : > { %1598 = vst [vmem:[%s2221_s18 + $0x898] sm:$0xff] %v925_v10  ;;  %1470 = vst [vmem:[%s2221_s18 + $0x498] sm:$0xff] %v893_v11 }
 0x207   : > { %1038 = vxpose.xlu1.b32.cont [4/16] %v420_v12, 128  ;;  %v926_v14 = vpop.trf.xlu1  ;;  %1006 = vxpose.xlu0.b32.cont [4/16] %v374_v13, 128  ;;  %v894_v15 = vpop.trf.xlu0  ;;  %v422_v12 = vld [vmem:[%s2147_s4 + $0x7d8] sm:$0xff]  ;;  %v421_v13 = vld [vmem:[%s2147_s4 + $0x7d0] sm:$0xff] }
 0x208   : > { %1606 = vst [vmem:[%s2221_s18 + $0x8d8] sm:$0xff] %v926_v14  ;;  %1478 = vst [vmem:[%s2221_s18 + $0x4d8] sm:$0xff] %v894_v15 }
 0x20b   : > { %1039 = vxpose.xlu1.b32.cont [5/16] %v423_v16, 128  ;;  %v927_v18 = vpop.trf.xlu1  ;;  %1007 = vxpose.xlu0.b32.cont [5/16] %v377_v17, 128  ;;  %v895_v19 = vpop.trf.xlu0  ;;  %v425_v16 = vld [vmem:[%s2147_s4 + $0x7f0] sm:$0xff]  ;;  %v424_v17 = vld [vmem:[%s2147_s4 + $0x7e8] sm:$0xff] }
 0x20c   : > { %1614 = vst [vmem:[%s2221_s18 + $0x918] sm:$0xff] %v927_v18  ;;  %1486 = vst [vmem:[%s2221_s18 + $0x518] sm:$0xff] %v895_v19 }
 0x20f   : > { %1040 = vxpose.xlu1.b32.cont [6/16] %v426_v20, 128  ;;  %v928_v22 = vpop.trf.xlu1  ;;  %1008 = vxpose.xlu0.b32.cont [6/16] %v380_v21, 128  ;;  %v896_v23 = vpop.trf.xlu0  ;;  %v428_v20 = vld [vmem:[%s2147_s4 + $0x808] sm:$0xff]  ;;  %v427_v21 = vld [vmem:[%s2147_s4 + $0x800] sm:$0xff] }
 0x210   : > { %1622 = vst [vmem:[%s2221_s18 + $0x958] sm:$0xff] %v928_v22  ;;  %1494 = vst [vmem:[%s2221_s18 + $0x558] sm:$0xff] %v896_v23 }
 0x213   : > { %1041 = vxpose.xlu1.b32.cont [7/16] %v429_v24, 128  ;;  %v929_v26 = vpop.trf.xlu1  ;;  %1009 = vxpose.xlu0.b32.cont [7/16] %v383_v25, 128  ;;  %v897_v27 = vpop.trf.xlu0  ;;  %v431_v24 = vld [vmem:[%s2147_s4 + $0x820] sm:$0xff]  ;;  %v430_v25 = vld [vmem:[%s2147_s4 + $0x818] sm:$0xff] }
 0x214   : > { %1630 = vst [vmem:[%s2221_s18 + $0x998] sm:$0xff] %v929_v26  ;;  %1502 = vst [vmem:[%s2221_s18 + $0x598] sm:$0xff] %v897_v27 }
 0x217   : > { %1042 = vxpose.xlu1.b32.cont [8/16] %v432_v28, 128  ;;  %v930_v30 = vpop.trf.xlu1  ;;  %1010 = vxpose.xlu0.b32.cont [8/16] %v386_v29, 128  ;;  %v898_v31 = vpop.trf.xlu0  ;;  %v434_v28 = vld [vmem:[%s2147_s4 + $0x838] sm:$0xff]  ;;  %v433_v29 = vld [vmem:[%s2147_s4 + $0x830] sm:$0xff] }
 0x218   : > { %1638 = vst [vmem:[%s2221_s18 + $0x9d8] sm:$0xff] %v930_v30  ;;  %1510 = vst [vmem:[%s2221_s18 + $0x5d8] sm:$0xff] %v898_v31 }
 0x21b   : > { %1043 = vxpose.xlu1.b32.cont [9/16] %v435_v32, 128  ;;  %v931_v34 = vpop.trf.xlu1  ;;  %1011 = vxpose.xlu0.b32.cont [9/16] %v389_v33, 128  ;;  %v899_v35 = vpop.trf.xlu0  ;;  %v437_v32 = vld [vmem:[%s2147_s4 + $0x850] sm:$0xff]  ;;  %v436_v33 = vld [vmem:[%s2147_s4 + $0x848] sm:$0xff] }
 0x21c   : > { %1646 = vst [vmem:[%s2221_s18 + $0xa18] sm:$0xff] %v931_v34  ;;  %1518 = vst [vmem:[%s2221_s18 + $0x618] sm:$0xff] %v899_v35 }
 0x21f   : > { %1044 = vxpose.xlu1.b32.cont [10/16] %v438_v36, 128  ;;  %v932_v38 = vpop.trf.xlu1  ;;  %1012 = vxpose.xlu0.b32.cont [10/16] %v392_v37, 128  ;;  %v900_v39 = vpop.trf.xlu0  ;;  %v440_v36 = vld [vmem:[%s2147_s4 + $0x868] sm:$0xff]  ;;  %v439_v37 = vld [vmem:[%s2147_s4 + $0x860] sm:$0xff] }
 0x220   : > { %1654 = vst [vmem:[%s2221_s18 + $0xa58] sm:$0xff] %v932_v38  ;;  %1526 = vst [vmem:[%s2221_s18 + $0x658] sm:$0xff] %v900_v39 }
 0x223   : > { %1045 = vxpose.xlu1.b32.cont [11/16] %v441_v40, 128  ;;  %v933_v42 = vpop.trf.xlu1  ;;  %1013 = vxpose.xlu0.b32.cont [11/16] %v395_v41, 128  ;;  %v901_v43 = vpop.trf.xlu0  ;;  %v443_v40 = vld [vmem:[%s2147_s4 + $0x880] sm:$0xff]  ;;  %v442_v41 = vld [vmem:[%s2147_s4 + $0x878] sm:$0xff] }
 0x224   : > { %1662 = vst [vmem:[%s2221_s18 + $0xa98] sm:$0xff] %v933_v42  ;;  %1534 = vst [vmem:[%s2221_s18 + $0x698] sm:$0xff] %v901_v43 }
 0x227   : > { %1046 = vxpose.xlu1.b32.cont [12/16] %v444_v44, 128  ;;  %v934_v46 = vpop.trf.xlu1  ;;  %1014 = vxpose.xlu0.b32.cont [12/16] %v398_v45, 128  ;;  %v902_v47 = vpop.trf.xlu0  ;;  %v446_v44 = vld [vmem:[%s2147_s4 + $0x898] sm:$0xff]  ;;  %v445_v45 = vld [vmem:[%s2147_s4 + $0x890] sm:$0xff] }
 0x228   : > { %1670 = vst [vmem:[%s2221_s18 + $0xad8] sm:$0xff] %v934_v46  ;;  %1542 = vst [vmem:[%s2221_s18 + $0x6d8] sm:$0xff] %v902_v47 }
 0x22b   : > { %1047 = vxpose.xlu1.b32.cont [13/16] %v447_v48, 128  ;;  %v935_v50 = vpop.trf.xlu1  ;;  %1015 = vxpose.xlu0.b32.cont [13/16] %v401_v49, 128  ;;  %v903_v51 = vpop.trf.xlu0  ;;  %v449_v48 = vld [vmem:[%s2147_s4 + $0x8b0] sm:$0xff]  ;;  %v448_v49 = vld [vmem:[%s2147_s4 + $0x8a8] sm:$0xff] }
 0x22c   : > { %1678 = vst [vmem:[%s2221_s18 + $0xb18] sm:$0xff] %v935_v50  ;;  %1550 = vst [vmem:[%s2221_s18 + $0x718] sm:$0xff] %v903_v51 }
 0x22f   : > { %1048 = vxpose.xlu1.b32.cont [14/16] %v450_v52, 128  ;;  %v936_v54 = vpop.trf.xlu1  ;;  %1016 = vxpose.xlu0.b32.cont [14/16] %v404_v53, 128  ;;  %v904_v55 = vpop.trf.xlu0  ;;  %v452_v52 = vld [vmem:[%s2147_s4 + $0x8c8] sm:$0xff]  ;;  %v451_v53 = vld [vmem:[%s2147_s4 + $0x8c0] sm:$0xff] }
 0x230   : > { %1686 = vst [vmem:[%s2221_s18 + $0xb58] sm:$0xff] %v936_v54  ;;  %1558 = vst [vmem:[%s2221_s18 + $0x758] sm:$0xff] %v904_v55 }
 0x233   : > { %1049 = vxpose.xlu1.b32.cont [15/16] %v453_v56, 128  ;;  %v937_v58 = vpop.trf.xlu1  ;;  %1017 = vxpose.xlu0.b32.cont [15/16] %v407_v57, 128  ;;  %v905_v59 = vpop.trf.xlu0  ;;  %v455_v56 = vld [vmem:[%s2147_s4 + $0x8e0] sm:$0xff]  ;;  %v454_v57 = vld [vmem:[%s2147_s4 + $0x8d8] sm:$0xff] }
 0x234   : > { %1694 = vst [vmem:[%s2221_s18 + $0xb98] sm:$0xff] %v937_v58  ;;  %1566 = vst [vmem:[%s2221_s18 + $0x798] sm:$0xff] %v905_v59 }
 0x237   : > { %1050 = vxpose.xlu1.b32.end [16/16] %v456_v60, 128  ;;  %v938_v62 = vpop.trf.xlu1  ;;  %1018 = vxpose.xlu0.b32.end [16/16] %v410_v61, 128  ;;  %v906_v63 = vpop.trf.xlu0  ;;  %v458_v60 = vld [vmem:[%s2147_s4 + $0x8f8] sm:$0xff]  ;;  %v457_v61 = vld [vmem:[%s2147_s4 + $0x8f0] sm:$0xff] }
 0x238   : > { %1702 = vst [vmem:[%s2221_s18 + $0xbd8] sm:$0xff] %v938_v62  ;;  %1574 = vst [vmem:[%s2221_s18 + $0x7d8] sm:$0xff] %v906_v63 }
 0x23b   : > { %1099 = vxpose.xlu1.b32.start [1/16] %v413_v0, 128  ;;  %v987_v2 = vpop.trf.xlu1  ;;  %1067 = vxpose.xlu0.b32.start [1/16] %v412_v1, 128  ;;  %v955_v3 = vpop.trf.xlu0  ;;  %v460_v0 = vld [vmem:[%s2147_s4 + $0x908] sm:$0xff]  ;;  %v459_v1 = vld [vmem:[%s2147_s4 + $0x900] sm:$0xff] }
 0x23c   : > { %1455 = vst [vmem:[%s2221_s18 + $0x420] sm:$0xff] %v987_v2  ;;  %1327 = vst [vmem:[%s2221_s18 + $0x20] sm:$0xff] %v955_v3 }
 0x23f   : > { %1100 = vxpose.xlu1.b32.cont [2/16] %v416_v4, 128  ;;  %v988_v6 = vpop.trf.xlu1  ;;  %1068 = vxpose.xlu0.b32.cont [2/16] %v415_v5, 128  ;;  %v956_v7 = vpop.trf.xlu0  ;;  %v463_v4 = vld [vmem:[%s2147_s4 + $0x920] sm:$0xff]  ;;  %v462_v5 = vld [vmem:[%s2147_s4 + $0x918] sm:$0xff] }
 0x240   : > { %1463 = vst [vmem:[%s2221_s18 + $0x460] sm:$0xff] %v988_v6  ;;  %1335 = vst [vmem:[%s2221_s18 + $0x60] sm:$0xff] %v956_v7 }
 0x243   : > { %1101 = vxpose.xlu1.b32.cont [3/16] %v419_v8, 128  ;;  %v989_v10 = vpop.trf.xlu1  ;;  %1069 = vxpose.xlu0.b32.cont [3/16] %v418_v9, 128  ;;  %v957_v11 = vpop.trf.xlu0  ;;  %v466_v8 = vld [vmem:[%s2147_s4 + $0x938] sm:$0xff]  ;;  %v465_v9 = vld [vmem:[%s2147_s4 + $0x930] sm:$0xff] }
 0x244   : > { %1471 = vst [vmem:[%s2221_s18 + $0x4a0] sm:$0xff] %v989_v10  ;;  %1343 = vst [vmem:[%s2221_s18 + $0xa0] sm:$0xff] %v957_v11 }
 0x247   : > { %1102 = vxpose.xlu1.b32.cont [4/16] %v422_v12, 128  ;;  %v990_v14 = vpop.trf.xlu1  ;;  %1070 = vxpose.xlu0.b32.cont [4/16] %v421_v13, 128  ;;  %v958_v15 = vpop.trf.xlu0  ;;  %v469_v12 = vld [vmem:[%s2147_s4 + $0x950] sm:$0xff]  ;;  %v468_v13 = vld [vmem:[%s2147_s4 + $0x948] sm:$0xff] }
 0x248   : > { %1479 = vst [vmem:[%s2221_s18 + $0x4e0] sm:$0xff] %v990_v14  ;;  %1351 = vst [vmem:[%s2221_s18 + $0xe0] sm:$0xff] %v958_v15 }
 0x24b   : > { %1103 = vxpose.xlu1.b32.cont [5/16] %v425_v16, 128  ;;  %v991_v18 = vpop.trf.xlu1  ;;  %1071 = vxpose.xlu0.b32.cont [5/16] %v424_v17, 128  ;;  %v959_v19 = vpop.trf.xlu0  ;;  %v472_v16 = vld [vmem:[%s2147_s4 + $0x968] sm:$0xff]  ;;  %v471_v17 = vld [vmem:[%s2147_s4 + $0x960] sm:$0xff] }
 0x24c   : > { %1487 = vst [vmem:[%s2221_s18 + $0x520] sm:$0xff] %v991_v18  ;;  %1359 = vst [vmem:[%s2221_s18 + $0x120] sm:$0xff] %v959_v19 }
 0x24f   : > { %1104 = vxpose.xlu1.b32.cont [6/16] %v428_v20, 128  ;;  %v992_v22 = vpop.trf.xlu1  ;;  %1072 = vxpose.xlu0.b32.cont [6/16] %v427_v21, 128  ;;  %v960_v23 = vpop.trf.xlu0  ;;  %v475_v20 = vld [vmem:[%s2147_s4 + $0x980] sm:$0xff]  ;;  %v474_v21 = vld [vmem:[%s2147_s4 + $0x978] sm:$0xff] }
 0x250   : > { %1495 = vst [vmem:[%s2221_s18 + $0x560] sm:$0xff] %v992_v22  ;;  %1367 = vst [vmem:[%s2221_s18 + $0x160] sm:$0xff] %v960_v23 }
 0x253   : > { %1105 = vxpose.xlu1.b32.cont [7/16] %v431_v24, 128  ;;  %v993_v26 = vpop.trf.xlu1  ;;  %1073 = vxpose.xlu0.b32.cont [7/16] %v430_v25, 128  ;;  %v961_v27 = vpop.trf.xlu0  ;;  %v478_v24 = vld [vmem:[%s2147_s4 + $0x998] sm:$0xff]  ;;  %v477_v25 = vld [vmem:[%s2147_s4 + $0x990] sm:$0xff] }
 0x254   : > { %1503 = vst [vmem:[%s2221_s18 + $0x5a0] sm:$0xff] %v993_v26  ;;  %1375 = vst [vmem:[%s2221_s18 + $0x1a0] sm:$0xff] %v961_v27 }
 0x257   : > { %1106 = vxpose.xlu1.b32.cont [8/16] %v434_v28, 128  ;;  %v994_v30 = vpop.trf.xlu1  ;;  %1074 = vxpose.xlu0.b32.cont [8/16] %v433_v29, 128  ;;  %v962_v31 = vpop.trf.xlu0  ;;  %v481_v28 = vld [vmem:[%s2147_s4 + $0x9b0] sm:$0xff]  ;;  %v480_v29 = vld [vmem:[%s2147_s4 + $0x9a8] sm:$0xff] }
 0x258   : > { %1511 = vst [vmem:[%s2221_s18 + $0x5e0] sm:$0xff] %v994_v30  ;;  %1383 = vst [vmem:[%s2221_s18 + $0x1e0] sm:$0xff] %v962_v31 }
 0x25b   : > { %1107 = vxpose.xlu1.b32.cont [9/16] %v437_v32, 128  ;;  %v995_v34 = vpop.trf.xlu1  ;;  %1075 = vxpose.xlu0.b32.cont [9/16] %v436_v33, 128  ;;  %v963_v35 = vpop.trf.xlu0  ;;  %v484_v32 = vld [vmem:[%s2147_s4 + $0x9c8] sm:$0xff]  ;;  %v483_v33 = vld [vmem:[%s2147_s4 + $0x9c0] sm:$0xff] }
 0x25c   : > { %1519 = vst [vmem:[%s2221_s18 + $0x620] sm:$0xff] %v995_v34  ;;  %1391 = vst [vmem:[%s2221_s18 + $0x220] sm:$0xff] %v963_v35 }
 0x25f   : > { %1108 = vxpose.xlu1.b32.cont [10/16] %v440_v36, 128  ;;  %v996_v38 = vpop.trf.xlu1  ;;  %1076 = vxpose.xlu0.b32.cont [10/16] %v439_v37, 128  ;;  %v964_v39 = vpop.trf.xlu0  ;;  %v487_v36 = vld [vmem:[%s2147_s4 + $0x9e0] sm:$0xff]  ;;  %v486_v37 = vld [vmem:[%s2147_s4 + $0x9d8] sm:$0xff] }
 0x260   : > { %1527 = vst [vmem:[%s2221_s18 + $0x660] sm:$0xff] %v996_v38  ;;  %1399 = vst [vmem:[%s2221_s18 + $0x260] sm:$0xff] %v964_v39 }
 0x263   : > { %1109 = vxpose.xlu1.b32.cont [11/16] %v443_v40, 128  ;;  %v997_v42 = vpop.trf.xlu1  ;;  %1077 = vxpose.xlu0.b32.cont [11/16] %v442_v41, 128  ;;  %v965_v43 = vpop.trf.xlu0  ;;  %v490_v40 = vld [vmem:[%s2147_s4 + $0x9f8] sm:$0xff]  ;;  %v489_v41 = vld [vmem:[%s2147_s4 + $0x9f0] sm:$0xff] }
 0x264   : > { %1535 = vst [vmem:[%s2221_s18 + $0x6a0] sm:$0xff] %v997_v42  ;;  %1407 = vst [vmem:[%s2221_s18 + $0x2a0] sm:$0xff] %v965_v43 }
 0x267   : > { %1110 = vxpose.xlu1.b32.cont [12/16] %v446_v44, 128  ;;  %v998_v46 = vpop.trf.xlu1  ;;  %1078 = vxpose.xlu0.b32.cont [12/16] %v445_v45, 128  ;;  %v966_v47 = vpop.trf.xlu0  ;;  %v493_v44 = vld [vmem:[%s2147_s4 + $0xa10] sm:$0xff]  ;;  %v492_v45 = vld [vmem:[%s2147_s4 + $0xa08] sm:$0xff] }
 0x268   : > { %1543 = vst [vmem:[%s2221_s18 + $0x6e0] sm:$0xff] %v998_v46  ;;  %1415 = vst [vmem:[%s2221_s18 + $0x2e0] sm:$0xff] %v966_v47 }
 0x26b   : > { %1111 = vxpose.xlu1.b32.cont [13/16] %v449_v48, 128  ;;  %v999_v50 = vpop.trf.xlu1  ;;  %1079 = vxpose.xlu0.b32.cont [13/16] %v448_v49, 128  ;;  %v967_v51 = vpop.trf.xlu0  ;;  %v496_v48 = vld [vmem:[%s2147_s4 + $0xa28] sm:$0xff]  ;;  %v495_v49 = vld [vmem:[%s2147_s4 + $0xa20] sm:$0xff] }
 0x26c   : > { %1551 = vst [vmem:[%s2221_s18 + $0x720] sm:$0xff] %v999_v50  ;;  %1423 = vst [vmem:[%s2221_s18 + $0x320] sm:$0xff] %v967_v51 }
 0x26f   : > { %1112 = vxpose.xlu1.b32.cont [14/16] %v452_v52, 128  ;;  %v1000_v54 = vpop.trf.xlu1  ;;  %1080 = vxpose.xlu0.b32.cont [14/16] %v451_v53, 128  ;;  %v968_v55 = vpop.trf.xlu0  ;;  %v499_v52 = vld [vmem:[%s2147_s4 + $0xa40] sm:$0xff]  ;;  %v498_v53 = vld [vmem:[%s2147_s4 + $0xa38] sm:$0xff] }
 0x270   : > { %1559 = vst [vmem:[%s2221_s18 + $0x760] sm:$0xff] %v1000_v54  ;;  %1431 = vst [vmem:[%s2221_s18 + $0x360] sm:$0xff] %v968_v55 }
 0x273   : > { %1113 = vxpose.xlu1.b32.cont [15/16] %v455_v56, 128  ;;  %v1001_v58 = vpop.trf.xlu1  ;;  %1081 = vxpose.xlu0.b32.cont [15/16] %v454_v57, 128  ;;  %v969_v59 = vpop.trf.xlu0  ;;  %v502_v56 = vld [vmem:[%s2147_s4 + $0xa58] sm:$0xff]  ;;  %v501_v57 = vld [vmem:[%s2147_s4 + $0xa50] sm:$0xff] }
 0x274   : > { %1567 = vst [vmem:[%s2221_s18 + $0x7a0] sm:$0xff] %v1001_v58  ;;  %1439 = vst [vmem:[%s2221_s18 + $0x3a0] sm:$0xff] %v969_v59 }
 0x277   : > { %1114 = vxpose.xlu1.b32.end [16/16] %v458_v60, 128  ;;  %v1002_v62 = vpop.trf.xlu1  ;;  %1082 = vxpose.xlu0.b32.end [16/16] %v457_v61, 128  ;;  %v970_v63 = vpop.trf.xlu0  ;;  %v505_v60 = vld [vmem:[%s2147_s4 + $0xa70] sm:$0xff]  ;;  %v504_v61 = vld [vmem:[%s2147_s4 + $0xa68] sm:$0xff] }
 0x278   : > { %1575 = vst [vmem:[%s2221_s18 + $0x7e0] sm:$0xff] %v1002_v62  ;;  %1447 = vst [vmem:[%s2221_s18 + $0x3e0] sm:$0xff] %v970_v63 }
 0x27b   : > { %1163 = vxpose.xlu1.b32.start [1/16] %v460_v0, 128  ;;  %v1051_v2 = vpop.trf.xlu1  ;;  %1131 = vxpose.xlu0.b32.start [1/16] %v459_v1, 128  ;;  %v1019_v3 = vpop.trf.xlu0  ;;  %v507_v0 = vld [vmem:[%s2147_s4 + $0xa80] sm:$0xff]  ;;  %v461_v1 = vld [vmem:[%s2147_s4 + $0x910] sm:$0xff] }
 0x27c   : > { %1328 = vst [vmem:[%s2221_s18 + $0x28] sm:$0xff] %v1051_v2  ;;  %1583 = vst [vmem:[%s2221_s18 + $0x820] sm:$0xff] %v1019_v3 }
 0x27f   : > { %1164 = vxpose.xlu1.b32.cont [2/16] %v463_v4, 128  ;;  %v1052_v6 = vpop.trf.xlu1  ;;  %1132 = vxpose.xlu0.b32.cont [2/16] %v462_v5, 128  ;;  %v1020_v7 = vpop.trf.xlu0  ;;  %v510_v4 = vld [vmem:[%s2147_s4 + $0xa98] sm:$0xff]  ;;  %v464_v5 = vld [vmem:[%s2147_s4 + $0x928] sm:$0xff] }
 0x280   : > { %1336 = vst [vmem:[%s2221_s18 + $0x68] sm:$0xff] %v1052_v6  ;;  %1591 = vst [vmem:[%s2221_s18 + $0x860] sm:$0xff] %v1020_v7 }
 0x283   : > { %1165 = vxpose.xlu1.b32.cont [3/16] %v466_v8, 128  ;;  %v1053_v10 = vpop.trf.xlu1  ;;  %1133 = vxpose.xlu0.b32.cont [3/16] %v465_v9, 128  ;;  %v1021_v11 = vpop.trf.xlu0  ;;  %v513_v8 = vld [vmem:[%s2147_s4 + $0xab0] sm:$0xff]  ;;  %v467_v9 = vld [vmem:[%s2147_s4 + $0x940] sm:$0xff] }
 0x284   : > { %1344 = vst [vmem:[%s2221_s18 + $0xa8] sm:$0xff] %v1053_v10  ;;  %1599 = vst [vmem:[%s2221_s18 + $0x8a0] sm:$0xff] %v1021_v11 }
 0x287   : > { %1166 = vxpose.xlu1.b32.cont [4/16] %v469_v12, 128  ;;  %v1054_v14 = vpop.trf.xlu1  ;;  %1134 = vxpose.xlu0.b32.cont [4/16] %v468_v13, 128  ;;  %v1022_v15 = vpop.trf.xlu0  ;;  %v516_v12 = vld [vmem:[%s2147_s4 + $0xac8] sm:$0xff]  ;;  %v470_v13 = vld [vmem:[%s2147_s4 + $0x958] sm:$0xff] }
 0x288   : > { %1352 = vst [vmem:[%s2221_s18 + $0xe8] sm:$0xff] %v1054_v14  ;;  %1607 = vst [vmem:[%s2221_s18 + $0x8e0] sm:$0xff] %v1022_v15 }
 0x28b   : > { %1167 = vxpose.xlu1.b32.cont [5/16] %v472_v16, 128  ;;  %v1055_v18 = vpop.trf.xlu1  ;;  %1135 = vxpose.xlu0.b32.cont [5/16] %v471_v17, 128  ;;  %v1023_v19 = vpop.trf.xlu0  ;;  %v519_v16 = vld [vmem:[%s2147_s4 + $0xae0] sm:$0xff]  ;;  %v473_v17 = vld [vmem:[%s2147_s4 + $0x970] sm:$0xff] }
 0x28c   : > { %1360 = vst [vmem:[%s2221_s18 + $0x128] sm:$0xff] %v1055_v18  ;;  %1615 = vst [vmem:[%s2221_s18 + $0x920] sm:$0xff] %v1023_v19 }
 0x28f   : > { %1168 = vxpose.xlu1.b32.cont [6/16] %v475_v20, 128  ;;  %v1056_v22 = vpop.trf.xlu1  ;;  %1136 = vxpose.xlu0.b32.cont [6/16] %v474_v21, 128  ;;  %v1024_v23 = vpop.trf.xlu0  ;;  %v522_v20 = vld [vmem:[%s2147_s4 + $0xaf8] sm:$0xff]  ;;  %v476_v21 = vld [vmem:[%s2147_s4 + $0x988] sm:$0xff] }
 0x290   : > { %1368 = vst [vmem:[%s2221_s18 + $0x168] sm:$0xff] %v1056_v22  ;;  %1623 = vst [vmem:[%s2221_s18 + $0x960] sm:$0xff] %v1024_v23 }
 0x293   : > { %1169 = vxpose.xlu1.b32.cont [7/16] %v478_v24, 128  ;;  %v1057_v26 = vpop.trf.xlu1  ;;  %1137 = vxpose.xlu0.b32.cont [7/16] %v477_v25, 128  ;;  %v1025_v27 = vpop.trf.xlu0  ;;  %v525_v24 = vld [vmem:[%s2147_s4 + $0xb10] sm:$0xff]  ;;  %v479_v25 = vld [vmem:[%s2147_s4 + $0x9a0] sm:$0xff] }
 0x294   : > { %1376 = vst [vmem:[%s2221_s18 + $0x1a8] sm:$0xff] %v1057_v26  ;;  %1631 = vst [vmem:[%s2221_s18 + $0x9a0] sm:$0xff] %v1025_v27 }
 0x297   : > { %1170 = vxpose.xlu1.b32.cont [8/16] %v481_v28, 128  ;;  %v1058_v30 = vpop.trf.xlu1  ;;  %1138 = vxpose.xlu0.b32.cont [8/16] %v480_v29, 128  ;;  %v1026_v31 = vpop.trf.xlu0  ;;  %v528_v28 = vld [vmem:[%s2147_s4 + $0xb28] sm:$0xff]  ;;  %v482_v29 = vld [vmem:[%s2147_s4 + $0x9b8] sm:$0xff] }
 0x298   : > { %1384 = vst [vmem:[%s2221_s18 + $0x1e8] sm:$0xff] %v1058_v30  ;;  %1639 = vst [vmem:[%s2221_s18 + $0x9e0] sm:$0xff] %v1026_v31 }
 0x29b   : > { %1171 = vxpose.xlu1.b32.cont [9/16] %v484_v32, 128  ;;  %v1059_v34 = vpop.trf.xlu1  ;;  %1139 = vxpose.xlu0.b32.cont [9/16] %v483_v33, 128  ;;  %v1027_v35 = vpop.trf.xlu0  ;;  %v531_v32 = vld [vmem:[%s2147_s4 + $0xb40] sm:$0xff]  ;;  %v485_v33 = vld [vmem:[%s2147_s4 + $0x9d0] sm:$0xff] }
 0x29c   : > { %1392 = vst [vmem:[%s2221_s18 + $0x228] sm:$0xff] %v1059_v34  ;;  %1647 = vst [vmem:[%s2221_s18 + $0xa20] sm:$0xff] %v1027_v35 }
 0x29f   : > { %1172 = vxpose.xlu1.b32.cont [10/16] %v487_v36, 128  ;;  %v1060_v38 = vpop.trf.xlu1  ;;  %1140 = vxpose.xlu0.b32.cont [10/16] %v486_v37, 128  ;;  %v1028_v39 = vpop.trf.xlu0  ;;  %v534_v36 = vld [vmem:[%s2147_s4 + $0xb58] sm:$0xff]  ;;  %v488_v37 = vld [vmem:[%s2147_s4 + $0x9e8] sm:$0xff] }
 0x2a0   : > { %1400 = vst [vmem:[%s2221_s18 + $0x268] sm:$0xff] %v1060_v38  ;;  %1655 = vst [vmem:[%s2221_s18 + $0xa60] sm:$0xff] %v1028_v39 }
 0x2a3   : > { %1173 = vxpose.xlu1.b32.cont [11/16] %v490_v40, 128  ;;  %v1061_v42 = vpop.trf.xlu1  ;;  %1141 = vxpose.xlu0.b32.cont [11/16] %v489_v41, 128  ;;  %v1029_v43 = vpop.trf.xlu0  ;;  %v537_v40 = vld [vmem:[%s2147_s4 + $0xb70] sm:$0xff]  ;;  %v491_v41 = vld [vmem:[%s2147_s4 + $0xa00] sm:$0xff] }
 0x2a4   : > { %1408 = vst [vmem:[%s2221_s18 + $0x2a8] sm:$0xff] %v1061_v42  ;;  %1663 = vst [vmem:[%s2221_s18 + $0xaa0] sm:$0xff] %v1029_v43 }
 0x2a7   : > { %1174 = vxpose.xlu1.b32.cont [12/16] %v493_v44, 128  ;;  %v1062_v46 = vpop.trf.xlu1  ;;  %1142 = vxpose.xlu0.b32.cont [12/16] %v492_v45, 128  ;;  %v1030_v47 = vpop.trf.xlu0  ;;  %v540_v44 = vld [vmem:[%s2147_s4 + $0xb88] sm:$0xff]  ;;  %v494_v45 = vld [vmem:[%s2147_s4 + $0xa18] sm:$0xff] }
 0x2a8   : > { %1416 = vst [vmem:[%s2221_s18 + $0x2e8] sm:$0xff] %v1062_v46  ;;  %1671 = vst [vmem:[%s2221_s18 + $0xae0] sm:$0xff] %v1030_v47 }
 0x2ab   : > { %1175 = vxpose.xlu1.b32.cont [13/16] %v496_v48, 128  ;;  %v1063_v50 = vpop.trf.xlu1  ;;  %1143 = vxpose.xlu0.b32.cont [13/16] %v495_v49, 128  ;;  %v1031_v51 = vpop.trf.xlu0  ;;  %v543_v48 = vld [vmem:[%s2147_s4 + $0xba0] sm:$0xff]  ;;  %v497_v49 = vld [vmem:[%s2147_s4 + $0xa30] sm:$0xff] }
 0x2ac   : > { %1424 = vst [vmem:[%s2221_s18 + $0x328] sm:$0xff] %v1063_v50  ;;  %1679 = vst [vmem:[%s2221_s18 + $0xb20] sm:$0xff] %v1031_v51 }
 0x2af   : > { %1176 = vxpose.xlu1.b32.cont [14/16] %v499_v52, 128  ;;  %v1064_v54 = vpop.trf.xlu1  ;;  %1144 = vxpose.xlu0.b32.cont [14/16] %v498_v53, 128  ;;  %v1032_v55 = vpop.trf.xlu0  ;;  %v546_v52 = vld [vmem:[%s2147_s4 + $0xbb8] sm:$0xff]  ;;  %v500_v53 = vld [vmem:[%s2147_s4 + $0xa48] sm:$0xff] }
 0x2b0   : > { %1432 = vst [vmem:[%s2221_s18 + $0x368] sm:$0xff] %v1064_v54  ;;  %1687 = vst [vmem:[%s2221_s18 + $0xb60] sm:$0xff] %v1032_v55 }
 0x2b3   : > { %1177 = vxpose.xlu1.b32.cont [15/16] %v502_v56, 128  ;;  %v1065_v58 = vpop.trf.xlu1  ;;  %1145 = vxpose.xlu0.b32.cont [15/16] %v501_v57, 128  ;;  %v1033_v59 = vpop.trf.xlu0  ;;  %v549_v56 = vld [vmem:[%s2147_s4 + $0xbd0] sm:$0xff]  ;;  %v503_v57 = vld [vmem:[%s2147_s4 + $0xa60] sm:$0xff] }
 0x2b4   : > { %1440 = vst [vmem:[%s2221_s18 + $0x3a8] sm:$0xff] %v1065_v58  ;;  %1695 = vst [vmem:[%s2221_s18 + $0xba0] sm:$0xff] %v1033_v59 }
 0x2b7   : > { %1178 = vxpose.xlu1.b32.end [16/16] %v505_v60, 128  ;;  %v1066_v62 = vpop.trf.xlu1  ;;  %1146 = vxpose.xlu0.b32.end [16/16] %v504_v61, 128  ;;  %v1034_v63 = vpop.trf.xlu0  ;;  %v552_v60 = vld [vmem:[%s2147_s4 + $0xbe8] sm:$0xff]  ;;  %v506_v61 = vld [vmem:[%s2147_s4 + $0xa78] sm:$0xff] }
 0x2b8   : > { %1448 = vst [vmem:[%s2221_s18 + $0x3e8] sm:$0xff] %v1066_v62  ;;  %1703 = vst [vmem:[%s2221_s18 + $0xbe0] sm:$0xff] %v1034_v63 }
 0x2bb   : > { %1227 = vxpose.xlu1.b32.start [1/16] %v507_v0, 128  ;;  %v1115_v2 = vpop.trf.xlu1  ;;  %1195 = vxpose.xlu0.b32.start [1/16] %v461_v1, 128  ;;  %v1083_v3 = vpop.trf.xlu0  ;;  %v509_v0 = vld [vmem:[%s2147_s4 + $0xa90] sm:$0xff]  ;;  %v508_v1 = vld [vmem:[%s2147_s4 + $0xa88] sm:$0xff] }
 0x2bc   : > { %1584 = vst [vmem:[%s2221_s18 + $0x828] sm:$0xff] %v1115_v2  ;;  %1456 = vst [vmem:[%s2221_s18 + $0x428] sm:$0xff] %v1083_v3 }
 0x2bf   : > { %1228 = vxpose.xlu1.b32.cont [2/16] %v510_v4, 128  ;;  %v1116_v6 = vpop.trf.xlu1  ;;  %1196 = vxpose.xlu0.b32.cont [2/16] %v464_v5, 128  ;;  %v1084_v7 = vpop.trf.xlu0  ;;  %v512_v4 = vld [vmem:[%s2147_s4 + $0xaa8] sm:$0xff]  ;;  %v511_v5 = vld [vmem:[%s2147_s4 + $0xaa0] sm:$0xff] }
 0x2c0   : > { %1592 = vst [vmem:[%s2221_s18 + $0x868] sm:$0xff] %v1116_v6  ;;  %1464 = vst [vmem:[%s2221_s18 + $0x468] sm:$0xff] %v1084_v7 }
 0x2c3   : > { %1229 = vxpose.xlu1.b32.cont [3/16] %v513_v8, 128  ;;  %v1117_v10 = vpop.trf.xlu1  ;;  %1197 = vxpose.xlu0.b32.cont [3/16] %v467_v9, 128  ;;  %v1085_v11 = vpop.trf.xlu0  ;;  %v515_v8 = vld [vmem:[%s2147_s4 + $0xac0] sm:$0xff]  ;;  %v514_v9 = vld [vmem:[%s2147_s4 + $0xab8] sm:$0xff] }
 0x2c4   : > { %1600 = vst [vmem:[%s2221_s18 + $0x8a8] sm:$0xff] %v1117_v10  ;;  %1472 = vst [vmem:[%s2221_s18 + $0x4a8] sm:$0xff] %v1085_v11 }
 0x2c7   : > { %1230 = vxpose.xlu1.b32.cont [4/16] %v516_v12, 128  ;;  %v1118_v14 = vpop.trf.xlu1  ;;  %1198 = vxpose.xlu0.b32.cont [4/16] %v470_v13, 128  ;;  %v1086_v15 = vpop.trf.xlu0  ;;  %v518_v12 = vld [vmem:[%s2147_s4 + $0xad8] sm:$0xff]  ;;  %v517_v13 = vld [vmem:[%s2147_s4 + $0xad0] sm:$0xff] }
 0x2c8   : > { %1608 = vst [vmem:[%s2221_s18 + $0x8e8] sm:$0xff] %v1118_v14  ;;  %1480 = vst [vmem:[%s2221_s18 + $0x4e8] sm:$0xff] %v1086_v15 }
 0x2cb   : > { %1231 = vxpose.xlu1.b32.cont [5/16] %v519_v16, 128  ;;  %v1119_v18 = vpop.trf.xlu1  ;;  %1199 = vxpose.xlu0.b32.cont [5/16] %v473_v17, 128  ;;  %v1087_v19 = vpop.trf.xlu0  ;;  %v521_v16 = vld [vmem:[%s2147_s4 + $0xaf0] sm:$0xff]  ;;  %v520_v17 = vld [vmem:[%s2147_s4 + $0xae8] sm:$0xff] }
 0x2cc   : > { %1616 = vst [vmem:[%s2221_s18 + $0x928] sm:$0xff] %v1119_v18  ;;  %1488 = vst [vmem:[%s2221_s18 + $0x528] sm:$0xff] %v1087_v19 }
 0x2cf   : > { %1232 = vxpose.xlu1.b32.cont [6/16] %v522_v20, 128  ;;  %v1120_v22 = vpop.trf.xlu1  ;;  %1200 = vxpose.xlu0.b32.cont [6/16] %v476_v21, 128  ;;  %v1088_v23 = vpop.trf.xlu0  ;;  %v524_v20 = vld [vmem:[%s2147_s4 + $0xb08] sm:$0xff]  ;;  %v523_v21 = vld [vmem:[%s2147_s4 + $0xb00] sm:$0xff] }
 0x2d0   : > { %1624 = vst [vmem:[%s2221_s18 + $0x968] sm:$0xff] %v1120_v22  ;;  %1496 = vst [vmem:[%s2221_s18 + $0x568] sm:$0xff] %v1088_v23 }
 0x2d3   : > { %1233 = vxpose.xlu1.b32.cont [7/16] %v525_v24, 128  ;;  %v1121_v26 = vpop.trf.xlu1  ;;  %1201 = vxpose.xlu0.b32.cont [7/16] %v479_v25, 128  ;;  %v1089_v27 = vpop.trf.xlu0  ;;  %v527_v24 = vld [vmem:[%s2147_s4 + $0xb20] sm:$0xff]  ;;  %v526_v25 = vld [vmem:[%s2147_s4 + $0xb18] sm:$0xff] }
 0x2d4   : > { %1632 = vst [vmem:[%s2221_s18 + $0x9a8] sm:$0xff] %v1121_v26  ;;  %1504 = vst [vmem:[%s2221_s18 + $0x5a8] sm:$0xff] %v1089_v27 }
 0x2d7   : > { %1234 = vxpose.xlu1.b32.cont [8/16] %v528_v28, 128  ;;  %v1122_v30 = vpop.trf.xlu1  ;;  %1202 = vxpose.xlu0.b32.cont [8/16] %v482_v29, 128  ;;  %v1090_v31 = vpop.trf.xlu0  ;;  %v530_v28 = vld [vmem:[%s2147_s4 + $0xb38] sm:$0xff]  ;;  %v529_v29 = vld [vmem:[%s2147_s4 + $0xb30] sm:$0xff] }
 0x2d8   : > { %1640 = vst [vmem:[%s2221_s18 + $0x9e8] sm:$0xff] %v1122_v30  ;;  %1512 = vst [vmem:[%s2221_s18 + $0x5e8] sm:$0xff] %v1090_v31 }
 0x2db   : > { %1235 = vxpose.xlu1.b32.cont [9/16] %v531_v32, 128  ;;  %v1123_v34 = vpop.trf.xlu1  ;;  %1203 = vxpose.xlu0.b32.cont [9/16] %v485_v33, 128  ;;  %v1091_v35 = vpop.trf.xlu0  ;;  %v533_v32 = vld [vmem:[%s2147_s4 + $0xb50] sm:$0xff]  ;;  %v532_v33 = vld [vmem:[%s2147_s4 + $0xb48] sm:$0xff] }
 0x2dc   : > { %1648 = vst [vmem:[%s2221_s18 + $0xa28] sm:$0xff] %v1123_v34  ;;  %1520 = vst [vmem:[%s2221_s18 + $0x628] sm:$0xff] %v1091_v35 }
 0x2df   : > { %1236 = vxpose.xlu1.b32.cont [10/16] %v534_v36, 128  ;;  %v1124_v38 = vpop.trf.xlu1  ;;  %1204 = vxpose.xlu0.b32.cont [10/16] %v488_v37, 128  ;;  %v1092_v39 = vpop.trf.xlu0  ;;  %v536_v36 = vld [vmem:[%s2147_s4 + $0xb68] sm:$0xff]  ;;  %v535_v37 = vld [vmem:[%s2147_s4 + $0xb60] sm:$0xff] }
 0x2e0   : > { %1656 = vst [vmem:[%s2221_s18 + $0xa68] sm:$0xff] %v1124_v38  ;;  %1528 = vst [vmem:[%s2221_s18 + $0x668] sm:$0xff] %v1092_v39 }
 0x2e3   : > { %1237 = vxpose.xlu1.b32.cont [11/16] %v537_v40, 128  ;;  %v1125_v42 = vpop.trf.xlu1  ;;  %1205 = vxpose.xlu0.b32.cont [11/16] %v491_v41, 128  ;;  %v1093_v43 = vpop.trf.xlu0  ;;  %v539_v40 = vld [vmem:[%s2147_s4 + $0xb80] sm:$0xff]  ;;  %v538_v41 = vld [vmem:[%s2147_s4 + $0xb78] sm:$0xff] }
 0x2e4   : > { %1664 = vst [vmem:[%s2221_s18 + $0xaa8] sm:$0xff] %v1125_v42  ;;  %1536 = vst [vmem:[%s2221_s18 + $0x6a8] sm:$0xff] %v1093_v43 }
 0x2e7   : > { %1238 = vxpose.xlu1.b32.cont [12/16] %v540_v44, 128  ;;  %v1126_v46 = vpop.trf.xlu1  ;;  %1206 = vxpose.xlu0.b32.cont [12/16] %v494_v45, 128  ;;  %v1094_v47 = vpop.trf.xlu0  ;;  %v542_v44 = vld [vmem:[%s2147_s4 + $0xb98] sm:$0xff]  ;;  %v541_v45 = vld [vmem:[%s2147_s4 + $0xb90] sm:$0xff] }
 0x2e8   : > { %1672 = vst [vmem:[%s2221_s18 + $0xae8] sm:$0xff] %v1126_v46  ;;  %1544 = vst [vmem:[%s2221_s18 + $0x6e8] sm:$0xff] %v1094_v47 }
 0x2eb   : > { %1239 = vxpose.xlu1.b32.cont [13/16] %v543_v48, 128  ;;  %v1127_v50 = vpop.trf.xlu1  ;;  %1207 = vxpose.xlu0.b32.cont [13/16] %v497_v49, 128  ;;  %v1095_v51 = vpop.trf.xlu0  ;;  %v545_v48 = vld [vmem:[%s2147_s4 + $0xbb0] sm:$0xff]  ;;  %v544_v49 = vld [vmem:[%s2147_s4 + $0xba8] sm:$0xff] }
 0x2ec   : > { %1680 = vst [vmem:[%s2221_s18 + $0xb28] sm:$0xff] %v1127_v50  ;;  %1552 = vst [vmem:[%s2221_s18 + $0x728] sm:$0xff] %v1095_v51 }
 0x2ef   : > { %1240 = vxpose.xlu1.b32.cont [14/16] %v546_v52, 128  ;;  %v1128_v54 = vpop.trf.xlu1  ;;  %1208 = vxpose.xlu0.b32.cont [14/16] %v500_v53, 128  ;;  %v1096_v55 = vpop.trf.xlu0  ;;  %v548_v52 = vld [vmem:[%s2147_s4 + $0xbc8] sm:$0xff]  ;;  %v547_v53 = vld [vmem:[%s2147_s4 + $0xbc0] sm:$0xff] }
 0x2f0   : > { %1688 = vst [vmem:[%s2221_s18 + $0xb68] sm:$0xff] %v1128_v54  ;;  %1560 = vst [vmem:[%s2221_s18 + $0x768] sm:$0xff] %v1096_v55 }
 0x2f3   : > { %1241 = vxpose.xlu1.b32.cont [15/16] %v549_v56, 128  ;;  %v1129_v58 = vpop.trf.xlu1  ;;  %1209 = vxpose.xlu0.b32.cont [15/16] %v503_v57, 128  ;;  %v1097_v59 = vpop.trf.xlu0  ;;  %v551_v56 = vld [vmem:[%s2147_s4 + $0xbe0] sm:$0xff]  ;;  %v550_v57 = vld [vmem:[%s2147_s4 + $0xbd8] sm:$0xff] }
 0x2f4   : > { %1696 = vst [vmem:[%s2221_s18 + $0xba8] sm:$0xff] %v1129_v58  ;;  %1568 = vst [vmem:[%s2221_s18 + $0x7a8] sm:$0xff] %v1097_v59 }
 0x2f7   : > { %1242 = vxpose.xlu1.b32.end [16/16] %v552_v60, 128  ;;  %v1130_v62 = vpop.trf.xlu1  ;;  %1210 = vxpose.xlu0.b32.end [16/16] %v506_v61, 128  ;;  %v1098_v63 = vpop.trf.xlu0  ;;  %v554_v60 = vld [vmem:[%s2147_s4 + $0xbf8] sm:$0xff]  ;;  %v553_v61 = vld [vmem:[%s2147_s4 + $0xbf0] sm:$0xff] }
 0x2f8   : > { %1704 = vst [vmem:[%s2221_s18 + $0xbe8] sm:$0xff] %v1130_v62  ;;  %1576 = vst [vmem:[%s2221_s18 + $0x7e8] sm:$0xff] %v1098_v63 }
 0x2fb   : > { %1291 = vxpose.xlu1.b32.start [1/16] %v509_v0, 128  ;;  %v1179_v2 = vpop.trf.xlu1  ;;  %1259 = vxpose.xlu0.b32.start [1/16] %v508_v1, 128  ;;  %v1147_v3 = vpop.trf.xlu0 }
 0x2fc   : > { %1457 = vst [vmem:[%s2221_s18 + $0x430] sm:$0xff] %v1179_v2  ;;  %1329 = vst [vmem:[%s2221_s18 + $0x30] sm:$0xff] %v1147_v3 }
 0x2ff   : > { %1292 = vxpose.xlu1.b32.cont [2/16] %v512_v4, 128  ;;  %v1180_v6 = vpop.trf.xlu1  ;;  %1260 = vxpose.xlu0.b32.cont [2/16] %v511_v5, 128  ;;  %v1148_v7 = vpop.trf.xlu0 }
 0x300   : > { %1465 = vst [vmem:[%s2221_s18 + $0x470] sm:$0xff] %v1180_v6  ;;  %1337 = vst [vmem:[%s2221_s18 + $0x70] sm:$0xff] %v1148_v7 }
 0x303   : > { %1293 = vxpose.xlu1.b32.cont [3/16] %v515_v8, 128  ;;  %v1181_v10 = vpop.trf.xlu1  ;;  %1261 = vxpose.xlu0.b32.cont [3/16] %v514_v9, 128  ;;  %v1149_v11 = vpop.trf.xlu0 }
 0x304   : > { %1473 = vst [vmem:[%s2221_s18 + $0x4b0] sm:$0xff] %v1181_v10  ;;  %1345 = vst [vmem:[%s2221_s18 + $0xb0] sm:$0xff] %v1149_v11 }
 0x307   : > { %1294 = vxpose.xlu1.b32.cont [4/16] %v518_v12, 128  ;;  %v1182_v14 = vpop.trf.xlu1  ;;  %1262 = vxpose.xlu0.b32.cont [4/16] %v517_v13, 128  ;;  %v1150_v15 = vpop.trf.xlu0 }
 0x308   : > { %1481 = vst [vmem:[%s2221_s18 + $0x4f0] sm:$0xff] %v1182_v14  ;;  %1353 = vst [vmem:[%s2221_s18 + $0xf0] sm:$0xff] %v1150_v15 }
 0x30b   : > { %1295 = vxpose.xlu1.b32.cont [5/16] %v521_v16, 128  ;;  %v1183_v18 = vpop.trf.xlu1  ;;  %1263 = vxpose.xlu0.b32.cont [5/16] %v520_v17, 128  ;;  %v1151_v19 = vpop.trf.xlu0 }
 0x30c   : > { %1489 = vst [vmem:[%s2221_s18 + $0x530] sm:$0xff] %v1183_v18  ;;  %1361 = vst [vmem:[%s2221_s18 + $0x130] sm:$0xff] %v1151_v19 }
 0x30f   : > { %1296 = vxpose.xlu1.b32.cont [6/16] %v524_v20, 128  ;;  %v1184_v22 = vpop.trf.xlu1  ;;  %1264 = vxpose.xlu0.b32.cont [6/16] %v523_v21, 128  ;;  %v1152_v23 = vpop.trf.xlu0 }
 0x310   : > { %1497 = vst [vmem:[%s2221_s18 + $0x570] sm:$0xff] %v1184_v22  ;;  %1369 = vst [vmem:[%s2221_s18 + $0x170] sm:$0xff] %v1152_v23 }
 0x313   : > { %1297 = vxpose.xlu1.b32.cont [7/16] %v527_v24, 128  ;;  %v1185_v26 = vpop.trf.xlu1  ;;  %1265 = vxpose.xlu0.b32.cont [7/16] %v526_v25, 128  ;;  %v1153_v27 = vpop.trf.xlu0 }
 0x314   : > { %1505 = vst [vmem:[%s2221_s18 + $0x5b0] sm:$0xff] %v1185_v26  ;;  %1377 = vst [vmem:[%s2221_s18 + $0x1b0] sm:$0xff] %v1153_v27 }
 0x317   : > { %1298 = vxpose.xlu1.b32.cont [8/16] %v530_v28, 128  ;;  %v1186_v30 = vpop.trf.xlu1  ;;  %1266 = vxpose.xlu0.b32.cont [8/16] %v529_v29, 128  ;;  %v1154_v31 = vpop.trf.xlu0 }
 0x318   : > { %1513 = vst [vmem:[%s2221_s18 + $0x5f0] sm:$0xff] %v1186_v30  ;;  %1385 = vst [vmem:[%s2221_s18 + $0x1f0] sm:$0xff] %v1154_v31 }
 0x31b   : > { %1299 = vxpose.xlu1.b32.cont [9/16] %v533_v32, 128  ;;  %v1187_v34 = vpop.trf.xlu1  ;;  %1267 = vxpose.xlu0.b32.cont [9/16] %v532_v33, 128  ;;  %v1155_v35 = vpop.trf.xlu0 }
 0x31c   : > { %1521 = vst [vmem:[%s2221_s18 + $0x630] sm:$0xff] %v1187_v34  ;;  %1393 = vst [vmem:[%s2221_s18 + $0x230] sm:$0xff] %v1155_v35 }
 0x31f   : > { %1300 = vxpose.xlu1.b32.cont [10/16] %v536_v36, 128  ;;  %v1188_v38 = vpop.trf.xlu1  ;;  %1268 = vxpose.xlu0.b32.cont [10/16] %v535_v37, 128  ;;  %v1156_v39 = vpop.trf.xlu0 }
 0x320   : > { %1529 = vst [vmem:[%s2221_s18 + $0x670] sm:$0xff] %v1188_v38  ;;  %1401 = vst [vmem:[%s2221_s18 + $0x270] sm:$0xff] %v1156_v39 }
 0x323   : > { %1301 = vxpose.xlu1.b32.cont [11/16] %v539_v40, 128  ;;  %v1189_v42 = vpop.trf.xlu1  ;;  %1269 = vxpose.xlu0.b32.cont [11/16] %v538_v41, 128  ;;  %v1157_v43 = vpop.trf.xlu0 }
 0x324   : > { %1537 = vst [vmem:[%s2221_s18 + $0x6b0] sm:$0xff] %v1189_v42  ;;  %1409 = vst [vmem:[%s2221_s18 + $0x2b0] sm:$0xff] %v1157_v43 }
 0x327   : > { %1302 = vxpose.xlu1.b32.cont [12/16] %v542_v44, 128  ;;  %v1190_v46 = vpop.trf.xlu1  ;;  %1270 = vxpose.xlu0.b32.cont [12/16] %v541_v45, 128  ;;  %v1158_v47 = vpop.trf.xlu0 }
 0x328   : > { %1545 = vst [vmem:[%s2221_s18 + $0x6f0] sm:$0xff] %v1190_v46  ;;  %1417 = vst [vmem:[%s2221_s18 + $0x2f0] sm:$0xff] %v1158_v47 }
 0x32b   : > { %1303 = vxpose.xlu1.b32.cont [13/16] %v545_v48, 128  ;;  %v1191_v50 = vpop.trf.xlu1  ;;  %1271 = vxpose.xlu0.b32.cont [13/16] %v544_v49, 128  ;;  %v1159_v51 = vpop.trf.xlu0 }
 0x32c   : > { %1553 = vst [vmem:[%s2221_s18 + $0x730] sm:$0xff] %v1191_v50  ;;  %1425 = vst [vmem:[%s2221_s18 + $0x330] sm:$0xff] %v1159_v51 }
 0x32f   : > { %1304 = vxpose.xlu1.b32.cont [14/16] %v548_v52, 128  ;;  %v1192_v54 = vpop.trf.xlu1  ;;  %1272 = vxpose.xlu0.b32.cont [14/16] %v547_v53, 128  ;;  %v1160_v55 = vpop.trf.xlu0 }
 0x330   : > { %1561 = vst [vmem:[%s2221_s18 + $0x770] sm:$0xff] %v1192_v54  ;;  %1433 = vst [vmem:[%s2221_s18 + $0x370] sm:$0xff] %v1160_v55 }
 0x333   : > { %1305 = vxpose.xlu1.b32.cont [15/16] %v551_v56, 128  ;;  %v1193_v58 = vpop.trf.xlu1  ;;  %1273 = vxpose.xlu0.b32.cont [15/16] %v550_v57, 128  ;;  %v1161_v59 = vpop.trf.xlu0 }
 0x334   : > { %1569 = vst [vmem:[%s2221_s18 + $0x7b0] sm:$0xff] %v1193_v58  ;;  %1441 = vst [vmem:[%s2221_s18 + $0x3b0] sm:$0xff] %v1161_v59 }
 0x337   : > { %1306 = vxpose.xlu1.b32.end [16/16] %v554_v60, 128  ;;  %v1194_v62 = vpop.trf.xlu1  ;;  %1274 = vxpose.xlu0.b32.end [16/16] %v553_v61, 128  ;;  %v1162_v63 = vpop.trf.xlu0 }
 0x338   : > { %1577 = vst [vmem:[%s2221_s18 + $0x7f0] sm:$0xff] %v1194_v62  ;;  %1449 = vst [vmem:[%s2221_s18 + $0x3f0] sm:$0xff] %v1162_v63 }
 0x33b   : > { %v1243_v0 = vpop.trf.xlu1  ;;  %v1211_v1 = vpop.trf.xlu0 }
 0x33c   : > { %1330 = vst [vmem:[%s2221_s18 + $0x38] sm:$0xff] %v1243_v0  ;;  %1585 = vst [vmem:[%s2221_s18 + $0x830] sm:$0xff] %v1211_v1 }
 0x33f   : > { %v1244_v2 = vpop.trf.xlu1  ;;  %v1212_v3 = vpop.trf.xlu0 }
 0x340   : > { %1338 = vst [vmem:[%s2221_s18 + $0x78] sm:$0xff] %v1244_v2  ;;  %1593 = vst [vmem:[%s2221_s18 + $0x870] sm:$0xff] %v1212_v3 }
 0x343   : > { %v1245_v4 = vpop.trf.xlu1  ;;  %v1213_v5 = vpop.trf.xlu0 }
 0x344   : > { %1346 = vst [vmem:[%s2221_s18 + $0xb8] sm:$0xff] %v1245_v4  ;;  %1601 = vst [vmem:[%s2221_s18 + $0x8b0] sm:$0xff] %v1213_v5 }
 0x347   : > { %v1246_v6 = vpop.trf.xlu1  ;;  %v1214_v7 = vpop.trf.xlu0 }
 0x348   : > { %1354 = vst [vmem:[%s2221_s18 + $0xf8] sm:$0xff] %v1246_v6  ;;  %1609 = vst [vmem:[%s2221_s18 + $0x8f0] sm:$0xff] %v1214_v7 }
 0x34b   : > { %v1247_v8 = vpop.trf.xlu1  ;;  %v1215_v9 = vpop.trf.xlu0 }
 0x34c   : > { %1362 = vst [vmem:[%s2221_s18 + $0x138] sm:$0xff] %v1247_v8  ;;  %1617 = vst [vmem:[%s2221_s18 + $0x930] sm:$0xff] %v1215_v9 }
 0x34f   : > { %v1248_v10 = vpop.trf.xlu1  ;;  %v1216_v11 = vpop.trf.xlu0 }
 0x350   : > { %1370 = vst [vmem:[%s2221_s18 + $0x178] sm:$0xff] %v1248_v10  ;;  %1625 = vst [vmem:[%s2221_s18 + $0x970] sm:$0xff] %v1216_v11 }
 0x353   : > { %v1249_v12 = vpop.trf.xlu1  ;;  %v1217_v13 = vpop.trf.xlu0 }
 0x354   : > { %1378 = vst [vmem:[%s2221_s18 + $0x1b8] sm:$0xff] %v1249_v12  ;;  %1633 = vst [vmem:[%s2221_s18 + $0x9b0] sm:$0xff] %v1217_v13 }
 0x357   : > { %v1250_v14 = vpop.trf.xlu1  ;;  %v1218_v15 = vpop.trf.xlu0 }
 0x358   : > { %1386 = vst [vmem:[%s2221_s18 + $0x1f8] sm:$0xff] %v1250_v14  ;;  %1641 = vst [vmem:[%s2221_s18 + $0x9f0] sm:$0xff] %v1218_v15 }
 0x35b   : > { %v1251_v16 = vpop.trf.xlu1  ;;  %v1219_v17 = vpop.trf.xlu0 }
 0x35c   : > { %1394 = vst [vmem:[%s2221_s18 + $0x238] sm:$0xff] %v1251_v16  ;;  %1649 = vst [vmem:[%s2221_s18 + $0xa30] sm:$0xff] %v1219_v17 }
 0x35f   : > { %v1252_v18 = vpop.trf.xlu1  ;;  %v1220_v19 = vpop.trf.xlu0 }
 0x360   : > { %1402 = vst [vmem:[%s2221_s18 + $0x278] sm:$0xff] %v1252_v18  ;;  %1657 = vst [vmem:[%s2221_s18 + $0xa70] sm:$0xff] %v1220_v19 }
 0x363   : > { %v1253_v20 = vpop.trf.xlu1  ;;  %v1221_v21 = vpop.trf.xlu0 }
 0x364   : > { %1410 = vst [vmem:[%s2221_s18 + $0x2b8] sm:$0xff] %v1253_v20  ;;  %1665 = vst [vmem:[%s2221_s18 + $0xab0] sm:$0xff] %v1221_v21 }
 0x367   : > { %v1254_v22 = vpop.trf.xlu1  ;;  %v1222_v23 = vpop.trf.xlu0 }
 0x368   : > { %1418 = vst [vmem:[%s2221_s18 + $0x2f8] sm:$0xff] %v1254_v22  ;;  %1673 = vst [vmem:[%s2221_s18 + $0xaf0] sm:$0xff] %v1222_v23 }
 0x36b   : > { %v1255_v24 = vpop.trf.xlu1  ;;  %v1223_v25 = vpop.trf.xlu0 }
 0x36c   : > { %1426 = vst [vmem:[%s2221_s18 + $0x338] sm:$0xff] %v1255_v24  ;;  %1681 = vst [vmem:[%s2221_s18 + $0xb30] sm:$0xff] %v1223_v25 }
 0x36f   : > { %v1256_v26 = vpop.trf.xlu1  ;;  %v1224_v27 = vpop.trf.xlu0 }
 0x370   : > { %1434 = vst [vmem:[%s2221_s18 + $0x378] sm:$0xff] %v1256_v26  ;;  %1689 = vst [vmem:[%s2221_s18 + $0xb70] sm:$0xff] %v1224_v27 }
 0x373   : > { %v1257_v28 = vpop.trf.xlu1  ;;  %v1225_v29 = vpop.trf.xlu0 }
 0x374   : > { %1442 = vst [vmem:[%s2221_s18 + $0x3b8] sm:$0xff] %v1257_v28  ;;  %1697 = vst [vmem:[%s2221_s18 + $0xbb0] sm:$0xff] %v1225_v29 }
 0x377   : > { %v1258_v30 = vpop.trf.xlu1  ;;  %v1226_v31 = vpop.trf.xlu0 }
 0x378   : > { %1450 = vst [vmem:[%s2221_s18 + $0x3f8] sm:$0xff] %v1258_v30  ;;  %1705 = vst [vmem:[%s2221_s18 + $0xbf0] sm:$0xff] %v1226_v31 }
 0x37b   : > { %v1307_v32 = vpop.trf.xlu1  ;;  %v1275_v33 = vpop.trf.xlu0 }
 0x37c   : > { %1586 = vst [vmem:[%s2221_s18 + $0x838] sm:$0xff] %v1307_v32  ;;  %1458 = vst [vmem:[%s2221_s18 + $0x438] sm:$0xff] %v1275_v33 }
 0x37f   : > { %v1308_v34 = vpop.trf.xlu1  ;;  %v1276_v35 = vpop.trf.xlu0 }
 0x380   : > { %1594 = vst [vmem:[%s2221_s18 + $0x878] sm:$0xff] %v1308_v34  ;;  %1466 = vst [vmem:[%s2221_s18 + $0x478] sm:$0xff] %v1276_v35 }
 0x383   : > { %v1309_v36 = vpop.trf.xlu1  ;;  %v1277_v37 = vpop.trf.xlu0 }
 0x384   : > { %1602 = vst [vmem:[%s2221_s18 + $0x8b8] sm:$0xff] %v1309_v36  ;;  %1474 = vst [vmem:[%s2221_s18 + $0x4b8] sm:$0xff] %v1277_v37 }
 0x387   : > { %v1310_v38 = vpop.trf.xlu1  ;;  %v1278_v39 = vpop.trf.xlu0 }
 0x388   : > { %1610 = vst [vmem:[%s2221_s18 + $0x8f8] sm:$0xff] %v1310_v38  ;;  %1482 = vst [vmem:[%s2221_s18 + $0x4f8] sm:$0xff] %v1278_v39 }
 0x38b   : > { %v1311_v40 = vpop.trf.xlu1  ;;  %v1279_v41 = vpop.trf.xlu0 }
 0x38c   : > { %1618 = vst [vmem:[%s2221_s18 + $0x938] sm:$0xff] %v1311_v40  ;;  %1490 = vst [vmem:[%s2221_s18 + $0x538] sm:$0xff] %v1279_v41 }
 0x38f   : > { %v1312_v42 = vpop.trf.xlu1  ;;  %v1280_v43 = vpop.trf.xlu0 }
 0x390   : > { %1626 = vst [vmem:[%s2221_s18 + $0x978] sm:$0xff] %v1312_v42  ;;  %1498 = vst [vmem:[%s2221_s18 + $0x578] sm:$0xff] %v1280_v43 }
 0x393   : > { %v1313_v44 = vpop.trf.xlu1  ;;  %v1281_v45 = vpop.trf.xlu0 }
 0x394   : > { %1634 = vst [vmem:[%s2221_s18 + $0x9b8] sm:$0xff] %v1313_v44  ;;  %1506 = vst [vmem:[%s2221_s18 + $0x5b8] sm:$0xff] %v1281_v45 }
 0x397   : > { %v1314_v46 = vpop.trf.xlu1  ;;  %v1282_v47 = vpop.trf.xlu0 }
 0x398   : > { %1642 = vst [vmem:[%s2221_s18 + $0x9f8] sm:$0xff] %v1314_v46  ;;  %1514 = vst [vmem:[%s2221_s18 + $0x5f8] sm:$0xff] %v1282_v47 }
 0x39b   : > { %v1315_v48 = vpop.trf.xlu1  ;;  %v1283_v49 = vpop.trf.xlu0 }
 0x39c   : > { %1650 = vst [vmem:[%s2221_s18 + $0xa38] sm:$0xff] %v1315_v48  ;;  %1522 = vst [vmem:[%s2221_s18 + $0x638] sm:$0xff] %v1283_v49 }
 0x39f   : > { %v1316_v50 = vpop.trf.xlu1  ;;  %v1284_v51 = vpop.trf.xlu0 }
 0x3a0   : > { %1658 = vst [vmem:[%s2221_s18 + $0xa78] sm:$0xff] %v1316_v50  ;;  %1530 = vst [vmem:[%s2221_s18 + $0x678] sm:$0xff] %v1284_v51 }
 0x3a3   : > { %v1317_v52 = vpop.trf.xlu1  ;;  %v1285_v53 = vpop.trf.xlu0 }
 0x3a4   : > { %1666 = vst [vmem:[%s2221_s18 + $0xab8] sm:$0xff] %v1317_v52  ;;  %1538 = vst [vmem:[%s2221_s18 + $0x6b8] sm:$0xff] %v1285_v53 }
 0x3a7   : > { %v1318_v54 = vpop.trf.xlu1  ;;  %v1286_v55 = vpop.trf.xlu0 }
 0x3a8   : > { %1674 = vst [vmem:[%s2221_s18 + $0xaf8] sm:$0xff] %v1318_v54  ;;  %1546 = vst [vmem:[%s2221_s18 + $0x6f8] sm:$0xff] %v1286_v55 }
 0x3ab   : > { %v1319_v56 = vpop.trf.xlu1  ;;  %v1287_v57 = vpop.trf.xlu0 }
 0x3ac   : > { %1682 = vst [vmem:[%s2221_s18 + $0xb38] sm:$0xff] %v1319_v56  ;;  %1554 = vst [vmem:[%s2221_s18 + $0x738] sm:$0xff] %v1287_v57 }
 0x3af   : > { %v1320_v58 = vpop.trf.xlu1  ;;  %v1288_v59 = vpop.trf.xlu0 }
 0x3b0   : > { %1690 = vst [vmem:[%s2221_s18 + $0xb78] sm:$0xff] %v1320_v58  ;;  %1562 = vst [vmem:[%s2221_s18 + $0x778] sm:$0xff] %v1288_v59 }
 0x3b3   : > { %v1321_v60 = vpop.trf.xlu1  ;;  %v1289_v61 = vpop.trf.xlu0 }
 0x3b4   : > { %1698 = vst [vmem:[%s2221_s18 + $0xbb8] sm:$0xff] %v1321_v60  ;;  %1570 = vst [vmem:[%s2221_s18 + $0x7b8] sm:$0xff] %v1289_v61 }
 0x3b7   : > { %v1322_v62 = vpop.trf.xlu1  ;;  %v1290_v63 = vpop.trf.xlu0 }
 0x3b8   : > { %1706 = vst [vmem:[%s2221_s18 + $0xbf8] sm:$0xff] %v1322_v62  ;;  %1578 = vst [vmem:[%s2221_s18 + $0x7f8] sm:$0xff] %v1290_v63 }
 0x3b9   : > { %1942 = shalt.err (!%p1939_p4)
}
 0x3ba   : > { %s1943_s17 = scalar_lea.hbm %s2928_s5, 49152  ;;  %s1947_s24 = scalar_lea.hbm %s2982_s1, 98304 }
 0x3bb   : > { %p1944_p6 = scmp.ne.s32.totalorder %s2928_s5, %s1943_s17  ;;  %p1948_p12 = scmp.lt.u32.totalorder %s2928_s5, %s2982_s1 }
 0x3bc   : > { %p1949_p1 = scmp.lt.u32.totalorder %s1947_s24, %s1943_s17  ;;  %p1951_p8 = scmp.lt.u32.totalorder %s1943_s17, %s2928_s5 }
 0x3bd   : > { %p1945_p7 = pnand %p1944_p6, %p2990_p9 }
 0x3be   : > { %p1950_p3 = por %p1949_p1, %p1948_p12 }
 0x3bf   : > { %p1946_p10 = pneg %p1945_p7 }
 0x3c0   : > { %p1952_p11 = por %p1951_p8, %p1950_p3 }
 0x3c2   : > { %p1953_p0 = pnand %p1952_p11, %p1946_p10 }
 0x3c4   : > { %1956 = shalt.err (!%p1953_p0)
}
 0x3c5   : > { %s2017_s3 = smov 1024   ;;  %s2018_s4 = smov 64  }
 0x3c6   : > { %1835 = dma.vmem_to_hbm [thread:$0]  (%p2990_p9), %s2930_s28, 49152, %s2928_s5, %s1708_s9, %s2017_s3, %s2017_s3, %s2018_s4  }
 0x3c7 PF: > { %s1741_s18 = sand.u32 1, %s1991_s6   ;;  %p2991_p5 = scmp.ne.s32.totalorder %s2987_s21, 0 }
 0x3c8   : > { %p2992_p13 = scmp.ge.s32.totalorder %s2011_s11, 2  ;;  %s1742_s25 = scalar_lea.sflag [#allocation4], %s1741_s18 }
 0x3ca   : > { %p1842_p2 = pnand %p2992_p13, %p2991_p5 }
 0x3cc   : > { %1986 = dma.done.wait (!%p1842_p2), %s1742_s25, 49152  }
 0x3cd   : > { %1988 = vsyncadd (!%p1842_p2), %s1742_s25, 4294918144  ;;  %s17_s11 = sadd.s32 1, %s2011_s11   ;;  %s2993_s6 = smov %s1995_s7 }
 0x3ce   : > { %p14_p4 = scmp.ge.s32.totalorder %s17_s11, 4   ;;  %s2994_s7 = smov %s1999_s8 }
 0x3cf   : > { %s2995_s8 = smov %s2085_s20  ;;  %s2996_s9 = smov %s2007_s10 }
 0x3d0   : > { %s2997_s10 = smov %s2999_s14  ;;  %16 = sbr.rel (!%p14_p4) target bundleno = 6 (0x6), region = 69 }
 0x3d7   :  { %1747 = vsyncpa [#allocation3], 1 }
 0x3d8   :  { %1749 = vsyncpa [#allocation3 + $0x1], 1 }
 0x3d9   :  { %1750 = vsyncpa [#allocation4], 1 }
 0x3da   :  { %1752 = vsyncpa [#allocation4 + $0x1], 1 }

</bundles_post_ra>
